<compile_context>
chip_gen: v7x
topology: tpu7x:2x2x1
jax: 0.10.0
libtpu: 0.0.40
codegen_flags: <defaults>
</compile_context>

<pallas_src>
import functools
import math

import jax
import jax.numpy as jnp
from jax.experimental import pallas as pl
from jax.experimental.pallas import tpu as pltpu


def _project_heads(x, w, heads, head_dim):
    """Project a (L, E) bf16 tile; return it head-major (H, L, D) in float32.

    `w` is either the block-diagonal kron(I_H, W^T) weight of shape (E, E)
    (head_dim < 128 -> keep 128-lane density) or the per-head W^T of shape
    (D, D) (head_dim >= 128 -> already lane-dense, 1/H the MXU FLOPs).
    """
    if w.shape[0] == x.shape[1]:  # block-diagonal path
        y = jnp.dot(x, w, preferred_element_type=jnp.float32)          # (L, E)
        return jnp.stack(
            [y[:, h * head_dim:(h + 1) * head_dim] for h in range(heads)],
            axis=0)                                                     # (H, L, D)
    # per-head lane-dense path
    return jnp.stack(
        [jnp.dot(x[:, h * head_dim:(h + 1) * head_dim], w,
                 preferred_element_type=jnp.float32) for h in range(heads)],
        axis=0)                                                         # (H, L, D)


def _mha_flash_kernel(heads, head_dim,
                      q_ref, k_ref, v_ref,
                      wq_ref, wk_ref, wv_ref, wo_ref, bo_ref,
                      o_ref,
                      q_sc, m_sc, l_sc, acc_sc):
    """grid = (batch, q_tiles, kv_tiles); online softmax over the kv axis."""
    ki = pl.program_id(2)

    @pl.when(ki == 0)
    def _init():
        m_sc[...] = jnp.full(m_sc.shape, -jnp.inf, dtype=m_sc.dtype)
        l_sc[...] = jnp.zeros(l_sc.shape, dtype=l_sc.dtype)
        acc_sc[...] = jnp.zeros(acc_sc.shape, dtype=acc_sc.dtype)
        # Project the query tile once per (n, qi); softmax scale already folded
        # into Wq at prep time.
        q_sc[...] = _project_heads(q_ref[0].astype(jnp.bfloat16), wq_ref[...],
                                   heads, head_dim).astype(jnp.bfloat16)

    kh = _project_heads(k_ref[0].astype(jnp.bfloat16), wk_ref[...],
                        heads, head_dim).astype(jnp.bfloat16)           # (H, TK, D)
    vh = _project_heads(v_ref[0].astype(jnp.bfloat16), wv_ref[...],
                        heads, head_dim).astype(jnp.bfloat16)           # (H, TK, D)

    # Scores for all heads: batched matmul, head dim leading both operands.
    s = jnp.einsum('hqd,hkd->hqk', q_sc[...], kh,
                   preferred_element_type=jnp.float32)                  # (H, TQ, TK)

    # Online (flash) softmax update; m/l/acc stay float32 in VMEM scratch.
    m_prev = m_sc[...]
    m_new = jnp.maximum(m_prev, jnp.max(s, axis=-1, keepdims=True))
    alpha = jnp.exp(m_prev - m_new)
    p = jnp.exp(s - m_new)
    l_sc[...] = alpha * l_sc[...] + jnp.sum(p, axis=-1, keepdims=True)
    acc_sc[...] = alpha * acc_sc[...] + jnp.einsum(
        'hqk,hkd->hqd', p.astype(jnp.bfloat16), vh,
        preferred_element_type=jnp.float32)                             # (H, TQ, D)
    m_sc[...] = m_new

    @pl.when(ki == pl.num_programs(2) - 1)
    def _finalize():
        # Deferred normalization on the small (H, TQ, D) context (EUP recip).
        ctx = acc_sc[...] * pl.reciprocal(l_sc[...], approx=True)
        # Merge heads back to the lane-dense (TQ, E) layout (once per Q tile).
        ctx = jnp.concatenate([ctx[h] for h in range(heads)], axis=-1)
        ctx = ctx.astype(jnp.bfloat16)
        out = jnp.dot(ctx, wo_ref[...], preferred_element_type=jnp.float32)
        out = out + bo_ref[...]
        o_ref[0] = out.astype(o_ref.dtype)


def _pick_tile(n, preferred):
    """Largest sublane-aligned tile <= preferred that divides n, else full axis."""
    if n <= preferred:
        return n
    t = (preferred // 8) * 8
    while t >= 8:
        if n % t == 0:
            return t
        t -= 8
    return n


def multi_head_attention(values, keys, query, params, embed_size, heads,
                         *, q_tile=256, kv_tile=512):
    """Forward pass matching the PyTorch MultiHeadAttention module."""
    N, value_len, _ = values.shape
    key_len = keys.shape[1]
    query_len = query.shape[1]
    head_dim = embed_size // heads
    assert head_dim * heads == embed_size, "embed_size must be divisible by heads"
    assert value_len == key_len  # attention contraction requires matching lengths

    scale = 1.0 / math.sqrt(float(embed_size))

    # ---- parameter prep (trace time, once): fold scale, pre-cast to bf16 ----
    wq_t = params["wq"].T.astype(jnp.float32) * scale     # scale folded into Wq
    wk_t = params["wk"].T.astype(jnp.float32)
    wv_t = params["wv"].T.astype(jnp.float32)
    if head_dim < 128:
        # Same per-head (D, D) Linear on every head == one lane-dense (E, E)
        # block-diagonal matmul on the packed (L, E) layout: kron(I_H, W^T).
        eye = jnp.eye(heads, dtype=jnp.float32)
        wq_p = jnp.kron(eye, wq_t).astype(jnp.bfloat16)
        wk_p = jnp.kron(eye, wk_t).astype(jnp.bfloat16)
        wv_p = jnp.kron(eye, wv_t).astype(jnp.bfloat16)
    else:
        # head_dim already lane-dense: per-head (D, D) projection, 1/H the FLOPs.
        wq_p = wq_t.astype(jnp.bfloat16)
        wk_p = wk_t.astype(jnp.bfloat16)
        wv_p = wv_t.astype(jnp.bfloat16)
    wo_p = params["wo"].T.astype(jnp.bfloat16)                      # (E, E)
    bo = params["bo"].reshape(1, embed_size).astype(jnp.float32)    # (1, E)

    tq = _pick_tile(query_len, q_tile)
    tk = _pick_tile(key_len, kv_tile)
    grid = (N, query_len // tq, key_len // tk)

    w_proj_spec = pl.BlockSpec(wq_p.shape, lambda n, qi, ki: (0, 0))
    wo_spec = pl.BlockSpec((embed_size, embed_size), lambda n, qi, ki: (0, 0))
    # TODO(synk): tag the constant weight specs with pipeline_mode=pl.Buffered(1)
    # (single-buffered resident weights) to halve their VMEM use once that path
    # is stable in the targeted jax release (matters most inside v7x's 64 MiB).

    # ---- explicit VMEM budget: weights + double-buffered blocks + scratch ----
    act_item = query.dtype.itemsize
    weight_bytes = 2 * sum(int(a.size) * a.dtype.itemsize
                           for a in (wq_p, wk_p, wv_p, wo_p, bo))
    block_bytes = 2 * ((tq + 2 * tk) * embed_size * act_item        # q + k + v
                       + tq * embed_size * 4)                       # out (f32)
    scratch_bytes = (heads * tq * head_dim * (2 + 4)                # q_sc + acc
                     + 2 * heads * tq * 128 * 4)                    # m/l (padded)
    scores_bytes = 4 * heads * tq * tk * 4                          # s/p temps
    vmem_limit = int(min(max(2 * (weight_bytes + block_bytes
                                  + scratch_bytes + scores_bytes),
                             32 * 1024 * 1024),
                         56 * 1024 * 1024))

    kernel = functools.partial(_mha_flash_kernel, heads, head_dim)

    return pl.pallas_call(
        kernel,
        out_shape=jax.ShapeDtypeStruct((N, query_len, embed_size), jnp.float32),
        grid=grid,
        in_specs=[
            pl.BlockSpec((1, tq, embed_size), lambda n, qi, ki: (n, qi, 0)),  # query
            pl.BlockSpec((1, tk, embed_size), lambda n, qi, ki: (n, ki, 0)),  # keys
            pl.BlockSpec((1, tk, embed_size), lambda n, qi, ki: (n, ki, 0)),  # values
            w_proj_spec,                                                      # Wq (scaled)
            w_proj_spec,                                                      # Wk
            w_proj_spec,                                                      # Wv
            wo_spec,                                                          # Wo^T
            pl.BlockSpec((1, embed_size), lambda n, qi, ki: (0, 0)),          # bias
        ],
        out_specs=pl.BlockSpec((1, tq, embed_size), lambda n, qi, ki: (n, qi, 0)),
        scratch_shapes=[
            pltpu.VMEM((heads, tq, head_dim), jnp.bfloat16),   # projected Q tile
            pltpu.VMEM((heads, tq, 1), jnp.float32),           # running max m
            pltpu.VMEM((heads, tq, 1), jnp.float32),           # running denom l
            pltpu.VMEM((heads, tq, head_dim), jnp.float32),    # context accumulator
        ],
        compiler_params=pltpu.CompilerParams(
            dimension_semantics=("parallel", "parallel", "arbitrary"),
            vmem_limit_bytes=vmem_limit),
    )(query, keys, values, wq_p, wk_p, wv_p, wo_p, bo)


# ----------------------------------------------------------------------------
# Pure-JAX reference (mirrors the PyTorch forward) for correctness checks.
# ----------------------------------------------------------------------------
def _reference(values, keys, query, params, embed_size, heads):
    N, value_len, _ = values.shape
    key_len, query_len = keys.shape[1], query.shape[1]
    D = embed_size // heads
    v = values.reshape(N, value_len, heads, D) @ params["wv"].T
    k = keys.reshape(N, key_len, heads, D) @ params["wk"].T
    q = query.reshape(N, query_len, heads, D) @ params["wq"].T
    energy = jnp.einsum("nqhd,nkhd->nhqk", q, k)
    attn = jax.nn.softmax(energy / math.sqrt(embed_size), axis=3)
    out = jnp.einsum("nhql,nlhd->nqhd", attn, v).reshape(N, query_len, heads * D)
    return out @ params["wo"].T + params["bo"]


def _run_case(base_key, case_id, N, L, embed_size, heads, q_tile, kv_tile, tol):
    head_dim = embed_size // heads
    key = jax.random.fold_in(base_key, case_id)
    k1, k2, k3, k4, k5, k6, k7, k8 = jax.random.split(key, 8)
    params = {
        "wq": jax.random.normal(k1, (head_dim, head_dim), jnp.float32) * 0.1,
        "wk": jax.random.normal(k2, (head_dim, head_dim), jnp.float32) * 0.1,
        "wv": jax.random.normal(k3, (head_dim, head_dim), jnp.float32) * 0.1,
        "wo": jax.random.normal(k4, (embed_size, embed_size), jnp.float32) * 0.1,
        "bo": jax.random.normal(k5, (embed_size,), jnp.float32) * 0.1,
    }
    values = jax.random.normal(k6, (N, L, embed_size), jnp.float32)
    keys_in = jax.random.normal(k7, (N, L, embed_size), jnp.float32)
    query = jax.random.normal(k8, (N, L, embed_size), jnp.float32)

    out = multi_head_attention(values, keys_in, query, params, embed_size, heads,
                               q_tile=q_tile, kv_tile=kv_tile)
    out = jax.block_until_ready(out)
    ref = _reference(values, keys_in, query, params, embed_size, heads)
    assert out.shape == (N, L, embed_size)
    err = float(jnp.max(jnp.abs(out - ref)))
    # bf16 MXU operands (f32 accumulate) + approx reciprocal -> bf16-level tol.
    assert jnp.allclose(out, ref, atol=tol, rtol=tol), (case_id, err)


if __name__ == "__main__":
    base = jax.random.PRNGKey(0)
    # 1) Module-scale smoke test (single Q/KV tile, block-diagonal projection).
    _run_case(base, 0, N=2, L=8, embed_size=32, heads=4,
              q_tile=256, kv_tile=512, tol=2e-2)
    # 2) Flash path: multiple Q and KV tiles (online softmax across KV tiles),
    #    lane-dense (8,128)-aligned blocks.
    _run_case(base, 1, N=2, L=256, embed_size=128, heads=4,
              q_tile=128, kv_tile=128, tol=5e-2)
    # 3) Lane-dense per-head projection path (head_dim >= 128, no kron).
    _run_case(base, 2, N=1, L=128, embed_size=256, heads=2,
              q_tile=128, kv_tile=128, tol=5e-2)
    print("KERNEL_OK")
</pallas_src>

<mosaic_0001>
module attributes {stable_mosaic.version = 11 : i64} {
  func.func @_mha_flash_kernel(%arg0: i32, %arg1: i32, %arg2: i32, %arg3: memref<1x8x32xf32, #tpu.memory_space<vmem>>, %arg4: memref<1x8x32xf32, #tpu.memory_space<vmem>>, %arg5: memref<1x8x32xf32, #tpu.memory_space<vmem>>, %arg6: memref<32x32xbf16, #tpu.memory_space<vmem>>, %arg7: memref<32x32xbf16, #tpu.memory_space<vmem>>, %arg8: memref<32x32xbf16, #tpu.memory_space<vmem>>, %arg9: memref<32x32xbf16, #tpu.memory_space<vmem>>, %arg10: memref<1x32xf32, #tpu.memory_space<vmem>>, %arg11: memref<1x8x32xf32, #tpu.memory_space<vmem>>, %arg12: memref<4x8x8xbf16, #tpu.memory_space<vmem>>, %arg13: memref<4x8x1xf32, #tpu.memory_space<vmem>>, %arg14: memref<4x8x1xf32, #tpu.memory_space<vmem>>, %arg15: memref<4x8x8xf32, #tpu.memory_space<vmem>>) attributes {dimension_semantics = [#tpu.dimension_semantics<parallel>, #tpu.dimension_semantics<parallel>, #tpu.dimension_semantics<arbitrary>], iteration_bounds = array<i64: 2, 1, 1>, scalar_prefetch = 0 : i64, scratch_operands = 4 : i64, tpu.core_type = #tpu.core_type<tc>, window_params = [{transform_indices = @transform_0, window_bounds = array<i64: 1, 8, 32>}, {transform_indices = @transform_1, window_bounds = array<i64: 1, 8, 32>}, {transform_indices = @transform_2, window_bounds = array<i64: 1, 8, 32>}, {pipeline_mode = #tpu.pipeline_mode<synchronous>, transform_indices = @transform_3, window_bounds = array<i64: 32, 32>}, {pipeline_mode = #tpu.pipeline_mode<synchronous>, transform_indices = @transform_4, window_bounds = array<i64: 32, 32>}, {pipeline_mode = #tpu.pipeline_mode<synchronous>, transform_indices = @transform_5, window_bounds = array<i64: 32, 32>}, {pipeline_mode = #tpu.pipeline_mode<synchronous>, transform_indices = @transform_6, window_bounds = array<i64: 32, 32>}, {pipeline_mode = #tpu.pipeline_mode<synchronous>, transform_indices = @transform_7, window_bounds = array<i64: 1, 32>}, {transform_indices = @transform_8, window_bounds = array<i64: 1, 8, 32>}]} {
    %c0_i32 = arith.constant 0 : i32
    %0 = arith.cmpi eq, %arg2, %c0_i32 : i32
    %1 = arith.extui %0 : i1 to i32
    %c0_i32_0 = arith.constant 0 : i32
    %2 = arith.cmpi ne, %1, %c0_i32_0 : i32
    scf.if %2 {
      %cst_38 = arith.constant 0xFF800000 : f32
      %61 = vector.broadcast %cst_38 : f32 to vector<4x8x1xf32>
      %c0_39 = arith.constant 0 : index
      %c0_40 = arith.constant 0 : index
      %c0_41 = arith.constant 0 : index
      %62 = vector.load %arg13[%c0_39, %c0_40, %c0_41] : memref<4x8x1xf32, #tpu.memory_space<vmem>>, vector<4x8x1xf32>
      tpu.vector_store %arg13[%c0_39, %c0_40, %c0_41], %61 {strides = array<i32>} : memref<4x8x1xf32, #tpu.memory_space<vmem>>, vector<4x8x1xf32>,
      %cst_42 = arith.constant 0.000000e+00 : f32
      %63 = vector.broadcast %cst_42 : f32 to vector<4x8x1xf32>
      %c0_43 = arith.constant 0 : index
      %c0_44 = arith.constant 0 : index
      %c0_45 = arith.constant 0 : index
      %64 = vector.load %arg14[%c0_43, %c0_44, %c0_45] : memref<4x8x1xf32, #tpu.memory_space<vmem>>, vector<4x8x1xf32>
      tpu.vector_store %arg14[%c0_43, %c0_44, %c0_45], %63 {strides = array<i32>} : memref<4x8x1xf32, #tpu.memory_space<vmem>>, vector<4x8x1xf32>,
      %cst_46 = arith.constant 0.000000e+00 : f32
      %65 = vector.broadcast %cst_46 : f32 to vector<4x8x8xf32>
      %c0_47 = arith.constant 0 : index
      %c0_48 = arith.constant 0 : index
      %c0_49 = arith.constant 0 : index
      %66 = vector.load %arg15[%c0_47, %c0_48, %c0_49] : memref<4x8x8xf32, #tpu.memory_space<vmem>>, vector<4x8x8xf32>
      tpu.vector_store %arg15[%c0_47, %c0_48, %c0_49], %65 {strides = array<i32>} : memref<4x8x8xf32, #tpu.memory_space<vmem>>, vector<4x8x8xf32>,
      %c0_50 = arith.constant 0 : index
      %c0_51 = arith.constant 0 : index
      %c0_52 = arith.constant 0 : index
      %67 = vector.load %arg3[%c0_50, %c0_51, %c0_52] : memref<1x8x32xf32, #tpu.memory_space<vmem>>, vector<1x8x32xf32>
      %68 = vector.shape_cast %67 : vector<1x8x32xf32> to vector<8x32xf32>
      %69 = arith.truncf %68 : vector<8x32xf32> to vector<8x32xbf16>
      %c0_53 = arith.constant 0 : index
      %c0_54 = arith.constant 0 : index
      %70 = vector.load %arg6[%c0_53, %c0_54] : memref<32x32xbf16, #tpu.memory_space<vmem>>, vector<32x32xbf16>
      %cst_55 = arith.constant dense<0.000000e+00> : vector<8x32xf32>
      %71 = tpu.matmul %69, %70, %cst_55 {dimension_numbers = #tpu.dot_dimension_numbers<[1], [0], [0], [1], [0, 0, 1, 1], [], []>} : vector<8x32xbf16>, vector<32x32xbf16>, vector<8x32xf32> -> vector<8x32xf32>
      %72 = vector.extract_strided_slice %71 {offsets = [0, 0], sizes = [8, 8], strides = [1, 1]} : vector<8x32xf32> to vector<8x8xf32>
      %73 = vector.extract_strided_slice %71 {offsets = [0, 8], sizes = [8, 8], strides = [1, 1]} : vector<8x32xf32> to vector<8x8xf32>
      %74 = vector.extract_strided_slice %71 {offsets = [0, 16], sizes = [8, 8], strides = [1, 1]} : vector<8x32xf32> to vector<8x8xf32>
      %75 = vector.extract_strided_slice %71 {offsets = [0, 24], sizes = [8, 8], strides = [1, 1]} : vector<8x32xf32> to vector<8x8xf32>
      %76 = vector.shape_cast %72 : vector<8x8xf32> to vector<1x8x8xf32>
      %77 = vector.shape_cast %73 : vector<8x8xf32> to vector<1x8x8xf32>
      %78 = vector.shape_cast %74 : vector<8x8xf32> to vector<1x8x8xf32>
      %79 = vector.shape_cast %75 : vector<8x8xf32> to vector<1x8x8xf32>
      %80 = tpu.concatenate %76, %77, %78, %79 in 0 : vector<1x8x8xf32>, vector<1x8x8xf32>, vector<1x8x8xf32>, vector<1x8x8xf32> -> vector<4x8x8xf32>
      %81 = arith.truncf %80 : vector<4x8x8xf32> to vector<4x8x8xbf16>
      %c0_56 = arith.constant 0 : index
      %c0_57 = arith.constant 0 : index
      %c0_58 = arith.constant 0 : index
      %82 = vector.load %arg12[%c0_56, %c0_57, %c0_58] : memref<4x8x8xbf16, #tpu.memory_space<vmem>>, vector<4x8x8xbf16>
      tpu.vector_store %arg12[%c0_56, %c0_57, %c0_58], %81 {strides = array<i32>} : memref<4x8x8xbf16, #tpu.memory_space<vmem>>, vector<4x8x8xbf16>,
    } else {
    }
    %c0 = arith.constant 0 : index
    %c0_1 = arith.constant 0 : index
    %c0_2 = arith.constant 0 : index
    %3 = vector.load %arg4[%c0, %c0_1, %c0_2] : memref<1x8x32xf32, #tpu.memory_space<vmem>>, vector<1x8x32xf32>
    %4 = vector.shape_cast %3 : vector<1x8x32xf32> to vector<8x32xf32>
    %5 = arith.truncf %4 : vector<8x32xf32> to vector<8x32xbf16>
    %c0_3 = arith.constant 0 : index
    %c0_4 = arith.constant 0 : index
    %6 = vector.load %arg7[%c0_3, %c0_4] : memref<32x32xbf16, #tpu.memory_space<vmem>>, vector<32x32xbf16>
    %cst = arith.constant dense<0.000000e+00> : vector<8x32xf32>
    %7 = tpu.matmul %5, %6, %cst {dimension_numbers = #tpu.dot_dimension_numbers<[1], [0], [0], [1], [0, 0, 1, 1], [], []>} : vector<8x32xbf16>, vector<32x32xbf16>, vector<8x32xf32> -> vector<8x32xf32>
    %8 = vector.extract_strided_slice %7 {offsets = [0, 0], sizes = [8, 8], strides = [1, 1]} : vector<8x32xf32> to vector<8x8xf32>
    %9 = vector.extract_strided_slice %7 {offsets = [0, 8], sizes = [8, 8], strides = [1, 1]} : vector<8x32xf32> to vector<8x8xf32>
    %10 = vector.extract_strided_slice %7 {offsets = [0, 16], sizes = [8, 8], strides = [1, 1]} : vector<8x32xf32> to vector<8x8xf32>
    %11 = vector.extract_strided_slice %7 {offsets = [0, 24], sizes = [8, 8], strides = [1, 1]} : vector<8x32xf32> to vector<8x8xf32>
    %12 = vector.shape_cast %8 : vector<8x8xf32> to vector<1x8x8xf32>
    %13 = vector.shape_cast %9 : vector<8x8xf32> to vector<1x8x8xf32>
    %14 = vector.shape_cast %10 : vector<8x8xf32> to vector<1x8x8xf32>
    %15 = vector.shape_cast %11 : vector<8x8xf32> to vector<1x8x8xf32>
    %16 = tpu.concatenate %12, %13, %14, %15 in 0 : vector<1x8x8xf32>, vector<1x8x8xf32>, vector<1x8x8xf32>, vector<1x8x8xf32> -> vector<4x8x8xf32>
    %17 = arith.truncf %16 : vector<4x8x8xf32> to vector<4x8x8xbf16>
    %c0_5 = arith.constant 0 : index
    %c0_6 = arith.constant 0 : index
    %c0_7 = arith.constant 0 : index
    %18 = vector.load %arg5[%c0_5, %c0_6, %c0_7] : memref<1x8x32xf32, #tpu.memory_space<vmem>>, vector<1x8x32xf32>
    %19 = vector.shape_cast %18 : vector<1x8x32xf32> to vector<8x32xf32>
    %20 = arith.truncf %19 : vector<8x32xf32> to vector<8x32xbf16>
    %c0_8 = arith.constant 0 : index
    %c0_9 = arith.constant 0 : index
    %21 = vector.load %arg8[%c0_8, %c0_9] : memref<32x32xbf16, #tpu.memory_space<vmem>>, vector<32x32xbf16>
    %cst_10 = arith.constant dense<0.000000e+00> : vector<8x32xf32>
    %22 = tpu.matmul %20, %21, %cst_10 {dimension_numbers = #tpu.dot_dimension_numbers<[1], [0], [0], [1], [0, 0, 1, 1], [], []>} : vector<8x32xbf16>, vector<32x32xbf16>, vector<8x32xf32> -> vector<8x32xf32>
    %23 = vector.extract_strided_slice %22 {offsets = [0, 0], sizes = [8, 8], strides = [1, 1]} : vector<8x32xf32> to vector<8x8xf32>
    %24 = vector.extract_strided_slice %22 {offsets = [0, 8], sizes = [8, 8], strides = [1, 1]} : vector<8x32xf32> to vector<8x8xf32>
    %25 = vector.extract_strided_slice %22 {offsets = [0, 16], sizes = [8, 8], strides = [1, 1]} : vector<8x32xf32> to vector<8x8xf32>
    %26 = vector.extract_strided_slice %22 {offsets = [0, 24], sizes = [8, 8], strides = [1, 1]} : vector<8x32xf32> to vector<8x8xf32>
    %27 = vector.shape_cast %23 : vector<8x8xf32> to vector<1x8x8xf32>
    %28 = vector.shape_cast %24 : vector<8x8xf32> to vector<1x8x8xf32>
    %29 = vector.shape_cast %25 : vector<8x8xf32> to vector<1x8x8xf32>
    %30 = vector.shape_cast %26 : vector<8x8xf32> to vector<1x8x8xf32>
    %31 = tpu.concatenate %27, %28, %29, %30 in 0 : vector<1x8x8xf32>, vector<1x8x8xf32>, vector<1x8x8xf32>, vector<1x8x8xf32> -> vector<4x8x8xf32>
    %32 = arith.truncf %31 : vector<4x8x8xf32> to vector<4x8x8xbf16>
    %c0_11 = arith.constant 0 : index
    %c0_12 = arith.constant 0 : index
    %c0_13 = arith.constant 0 : index
    %33 = vector.load %arg12[%c0_11, %c0_12, %c0_13] : memref<4x8x8xbf16, #tpu.memory_space<vmem>>, vector<4x8x8xbf16>
    "tpu.trace_start"() <{level = 10 : i32, message = "hqd,hkd->hqk"}> : () -> ()
    %cst_14 = arith.constant dense<0.000000e+00> : vector<4x8x8xf32>
    %34 = tpu.matmul %33, %17, %cst_14 {dimension_numbers = #tpu.dot_dimension_numbers<[2], [2], [1], [1], [0, 0, 0, 1, 1, 1], [0], [0]>} : vector<4x8x8xbf16>, vector<4x8x8xbf16>, vector<4x8x8xf32> -> vector<4x8x8xf32>
    "tpu.trace_stop"() : () -> ()
    %c0_15 = arith.constant 0 : index
    %c0_16 = arith.constant 0 : index
    %c0_17 = arith.constant 0 : index
    %35 = vector.load %arg13[%c0_15, %c0_16, %c0_17] : memref<4x8x1xf32, #tpu.memory_space<vmem>>, vector<4x8x1xf32>
    %cst_18 = arith.constant dense<0xFF800000> : vector<4x8xf32>
    %36 = vector.multi_reduction <maximumf>, %34, %cst_18 [2] : vector<4x8x8xf32> to vector<4x8xf32>
    %37 = vector.shape_cast %36 : vector<4x8xf32> to vector<4x8x1xf32>
    %38 = arith.maximumf %35, %37 : vector<4x8x1xf32>
    %39 = arith.subf %35, %38 : vector<4x8x1xf32>
    %40 = math.exp %39 : vector<4x8x1xf32>
    %41 = vector.broadcast %38 : vector<4x8x1xf32> to vector<4x8x8xf32>
    %42 = arith.subf %34, %41 : vector<4x8x8xf32>
    %43 = math.exp %42 : vector<4x8x8xf32>
    %c0_19 = arith.constant 0 : index
    %c0_20 = arith.constant 0 : index
    %c0_21 = arith.constant 0 : index
    %44 = vector.load %arg14[%c0_19, %c0_20, %c0_21] : memref<4x8x1xf32, #tpu.memory_space<vmem>>, vector<4x8x1xf32>
    %45 = arith.mulf %40, %44 : vector<4x8x1xf32>
    %cst_22 = arith.constant dense<0.000000e+00> : vector<4x8xf32>
    %46 = vector.multi_reduction <add>, %43, %cst_22 [2] : vector<4x8x8xf32> to vector<4x8xf32>
    %47 = vector.shape_cast %46 : vector<4x8xf32> to vector<4x8x1xf32>
    %48 = arith.addf %45, %47 : vector<4x8x1xf32>
    %c0_23 = arith.constant 0 : index
    %c0_24 = arith.constant 0 : index
    %c0_25 = arith.constant 0 : index
    %49 = vector.load %arg14[%c0_23, %c0_24, %c0_25] : memref<4x8x1xf32, #tpu.memory_space<vmem>>, vector<4x8x1xf32>
    tpu.vector_store %arg14[%c0_23, %c0_24, %c0_25], %48 {strides = array<i32>} : memref<4x8x1xf32, #tpu.memory_space<vmem>>, vector<4x8x1xf32>,
    %c0_26 = arith.constant 0 : index
    %c0_27 = arith.constant 0 : index
    %c0_28 = arith.constant 0 : index
    %50 = vector.load %arg15[%c0_26, %c0_27, %c0_28] : memref<4x8x8xf32, #tpu.memory_space<vmem>>, vector<4x8x8xf32>
    %51 = vector.broadcast %40 : vector<4x8x1xf32> to vector<4x8x8xf32>
    %52 = arith.mulf %51, %50 : vector<4x8x8xf32>
    %53 = arith.truncf %43 : vector<4x8x8xf32> to vector<4x8x8xbf16>
    "tpu.trace_start"() <{level = 10 : i32, message = "hqk,hkd->hqd"}> : () -> ()
    %cst_29 = arith.constant dense<0.000000e+00> : vector<4x8x8xf32>
    %54 = tpu.matmul %53, %32, %cst_29 {dimension_numbers = #tpu.dot_dimension_numbers<[2], [1], [1], [2], [0, 0, 0, 1, 1, 2], [0], [0]>} : vector<4x8x8xbf16>, vector<4x8x8xbf16>, vector<4x8x8xf32> -> vector<4x8x8xf32>
    "tpu.trace_stop"() : () -> ()
    %55 = arith.addf %52, %54 : vector<4x8x8xf32>
    %c0_30 = arith.constant 0 : index
    %c0_31 = arith.constant 0 : index
    %c0_32 = arith.constant 0 : index
    %56 = vector.load %arg15[%c0_30, %c0_31, %c0_32] : memref<4x8x8xf32, #tpu.memory_space<vmem>>, vector<4x8x8xf32>
    tpu.vector_store %arg15[%c0_30, %c0_31, %c0_32], %55 {strides = array<i32>} : memref<4x8x8xf32, #tpu.memory_space<vmem>>, vector<4x8x8xf32>,
    %c0_33 = arith.constant 0 : index
    %c0_34 = arith.constant 0 : index
    %c0_35 = arith.constant 0 : index
    %57 = vector.load %arg13[%c0_33, %c0_34, %c0_35] : memref<4x8x1xf32, #tpu.memory_space<vmem>>, vector<4x8x1xf32>
    tpu.vector_store %arg13[%c0_33, %c0_34, %c0_35], %38 {strides = array<i32>} : memref<4x8x1xf32, #tpu.memory_space<vmem>>, vector<4x8x1xf32>,
    %c0_i32_36 = arith.constant 0 : i32
    %58 = arith.cmpi eq, %arg2, %c0_i32_36 : i32
    %59 = arith.extui %58 : i1 to i32
    %c0_i32_37 = arith.constant 0 : i32
    %60 = arith.cmpi ne, %59, %c0_i32_37 : i32
    scf.if %60 {
      %c0_38 = arith.constant 0 : index
      %c0_39 = arith.constant 0 : index
      %c0_40 = arith.constant 0 : index
      %61 = vector.load %arg15[%c0_38, %c0_39, %c0_40] : memref<4x8x8xf32, #tpu.memory_space<vmem>>, vector<4x8x8xf32>
      %c0_41 = arith.constant 0 : index
      %c0_42 = arith.constant 0 : index
      %c0_43 = arith.constant 0 : index
      %62 = vector.load %arg14[%c0_41, %c0_42, %c0_43] : memref<4x8x1xf32, #tpu.memory_space<vmem>>, vector<4x8x1xf32>
      %63 = tpu.reciprocal %62 {approx = true} : vector<4x8x1xf32> -> vector<4x8x1xf32>
      %64 = vector.broadcast %63 : vector<4x8x1xf32> to vector<4x8x8xf32>
      %65 = arith.mulf %61, %64 : vector<4x8x8xf32>
      %66 = vector.extract_strided_slice %65 {offsets = [0, 0, 0], sizes = [1, 8, 8], strides = [1, 1, 1]} : vector<4x8x8xf32> to vector<1x8x8xf32>
      %67 = vector.shape_cast %66 : vector<1x8x8xf32> to vector<8x8xf32>
      %68 = vector.extract_strided_slice %65 {offsets = [1, 0, 0], sizes = [1, 8, 8], strides = [1, 1, 1]} : vector<4x8x8xf32> to vector<1x8x8xf32>
      %69 = vector.shape_cast %68 : vector<1x8x8xf32> to vector<8x8xf32>
      %70 = vector.extract_strided_slice %65 {offsets = [2, 0, 0], sizes = [1, 8, 8], strides = [1, 1, 1]} : vector<4x8x8xf32> to vector<1x8x8xf32>
      %71 = vector.shape_cast %70 : vector<1x8x8xf32> to vector<8x8xf32>
      %72 = vector.extract_strided_slice %65 {offsets = [3, 0, 0], sizes = [1, 8, 8], strides = [1, 1, 1]} : vector<4x8x8xf32> to vector<1x8x8xf32>
      %73 = vector.shape_cast %72 : vector<1x8x8xf32> to vector<8x8xf32>
      %74 = tpu.concatenate %67, %69, %71, %73 in 1 : vector<8x8xf32>, vector<8x8xf32>, vector<8x8xf32>, vector<8x8xf32> -> vector<8x32xf32>
      %75 = arith.truncf %74 : vector<8x32xf32> to vector<8x32xbf16>
      %c0_44 = arith.constant 0 : index
      %c0_45 = arith.constant 0 : index
      %76 = vector.load %arg9[%c0_44, %c0_45] : memref<32x32xbf16, #tpu.memory_space<vmem>>, vector<32x32xbf16>
      %cst_46 = arith.constant dense<0.000000e+00> : vector<8x32xf32>
      %77 = tpu.matmul %75, %76, %cst_46 {dimension_numbers = #tpu.dot_dimension_numbers<[1], [0], [0], [1], [0, 0, 1, 1], [], []>} : vector<8x32xbf16>, vector<32x32xbf16>, vector<8x32xf32> -> vector<8x32xf32>
      %c0_47 = arith.constant 0 : index
      %c0_48 = arith.constant 0 : index
      %78 = vector.load %arg10[%c0_47, %c0_48] : memref<1x32xf32, #tpu.memory_space<vmem>>, vector<1x32xf32>
      %79 = vector.broadcast %78 : vector<1x32xf32> to vector<8x32xf32>
      %80 = arith.addf %77, %79 : vector<8x32xf32>
      %c0_49 = arith.constant 0 : index
      %c0_50 = arith.constant 0 : index
      %c0_51 = arith.constant 0 : index
      %81 = vector.load %arg11[%c0_49, %c0_50, %c0_51] : memref<1x8x32xf32, #tpu.memory_space<vmem>>, vector<1x8x32xf32>
      %82 = vector.shape_cast %81 : vector<1x8x32xf32> to vector<8x32xf32>
      %83 = vector.shape_cast %80 : vector<8x32xf32> to vector<1x8x32xf32>
      tpu.vector_store %arg11[%c0_49, %c0_50, %c0_51], %83 {strides = array<i32>} : memref<1x8x32xf32, #tpu.memory_space<vmem>>, vector<1x8x32xf32>,
    } else {
    }
    return
  }
  func.func @transform_0(%arg0: i32, %arg1: i32, %arg2: i32) -> (i32, i32, i32) {
    %c0_i32 = arith.constant 0 : i32
    %c0_i32_0 = arith.constant 0 : i32
    return %arg0, %arg1, %c0_i32 : i32, i32, i32
  }
  func.func @transform_1(%arg0: i32, %arg1: i32, %arg2: i32) -> (i32, i32, i32) {
    %c0_i32 = arith.constant 0 : i32
    %c0_i32_0 = arith.constant 0 : i32
    return %arg0, %arg2, %c0_i32 : i32, i32, i32
  }
  func.func @transform_2(%arg0: i32, %arg1: i32, %arg2: i32) -> (i32, i32, i32) {
    %c0_i32 = arith.constant 0 : i32
    %c0_i32_0 = arith.constant 0 : i32
    return %arg0, %arg2, %c0_i32 : i32, i32, i32
  }
  func.func @transform_3(%arg0: i32, %arg1: i32, %arg2: i32) -> (i32, i32) {
    %c0_i32 = arith.constant 0 : i32
    %c0_i32_0 = arith.constant 0 : i32
    %c0_i32_1 = arith.constant 0 : i32
    return %c0_i32, %c0_i32_0 : i32, i32
  }
  func.func @transform_4(%arg0: i32, %arg1: i32, %arg2: i32) -> (i32, i32) {
    %c0_i32 = arith.constant 0 : i32
    %c0_i32_0 = arith.constant 0 : i32
    %c0_i32_1 = arith.constant 0 : i32
    return %c0_i32, %c0_i32_0 : i32, i32
  }
  func.func @transform_5(%arg0: i32, %arg1: i32, %arg2: i32) -> (i32, i32) {
    %c0_i32 = arith.constant 0 : i32
    %c0_i32_0 = arith.constant 0 : i32
    %c0_i32_1 = arith.constant 0 : i32
    return %c0_i32, %c0_i32_0 : i32, i32
  }
  func.func @transform_6(%arg0: i32, %arg1: i32, %arg2: i32) -> (i32, i32) {
    %c0_i32 = arith.constant 0 : i32
    %c0_i32_0 = arith.constant 0 : i32
    %c0_i32_1 = arith.constant 0 : i32
    return %c0_i32, %c0_i32_0 : i32, i32
  }
  func.func @transform_7(%arg0: i32, %arg1: i32, %arg2: i32) -> (i32, i32) {
    %c0_i32 = arith.constant 0 : i32
    %c0_i32_0 = arith.constant 0 : i32
    %c0_i32_1 = arith.constant 0 : i32
    return %c0_i32, %c0_i32_0 : i32, i32
  }
  func.func @transform_8(%arg0: i32, %arg1: i32, %arg2: i32) -> (i32, i32, i32) {
    %c0_i32 = arith.constant 0 : i32
    %c0_i32_0 = arith.constant 0 : i32
    return %arg0, %arg1, %c0_i32 : i32, i32, i32
  }
}

</mosaic_0001>

<bundles_post_ra>
// kernel: tpu_custom_call.1
= control target key start
LH: loop header
LB: loop body
LE: loop exit
PB: predicated region body
PF: predicated region fallthrough
CT: control target
= control target key end

     0   :  { %s2693_s0 = inlined_call_operand.hbm [shape: f32[2,8,32], index: 0, kind: input, shape index: {}]   ;;  %s2694_s1 = inlined_call_operand.hbm [shape: f32[2,8,32], index: 1, kind: input, shape index: {}]   ;;  %s2695_s2 = inlined_call_operand.hbm [shape: f32[2,8,32], index: 2, kind: input, shape index: {}]   ;;  %s2696_s3 = inlined_call_operand.hbm [shape: bf16[32,32], index: 3, kind: input, shape index: {}]   ;;  %s2697_s4 = inlined_call_operand.hbm [shape: bf16[32,32], index: 4, kind: input, shape index: {}]   ;;  %s2698_s5 = inlined_call_operand.vmem [shape: bf16[32,32], index: 5, kind: input, shape index: {}]   ;;  %s2699_s6 = inlined_call_operand.hbm [shape: bf16[32,32], index: 6, kind: input, shape index: {}]   ;;  %s2700_s7 = inlined_call_operand.vmem [shape: f32[1,32], index: 7, kind: input, shape index: {}]   ;;  %s2701_s8 = inlined_call_operand.hbm [shape: f32[2,8,32], index: 8, kind: output, shape index: {}]  }
   0x1   :  { %2728 = sst [smem:[#allocation31_spill]] %s2694_s1 }
   0x2   :  { %2729 = sst [smem:[#allocation32_spill]] %s2696_s3 }
   0x3   :  { %2730 = sst [smem:[#allocation33_spill]] %s2700_s7 }
   0x4   :  { %2731 = sst [smem:[#allocation34_spill]] %s2701_s8 }
   0x5   :  { %13 = vsyncpa [#allocation7], 0 }
   0x6   :  { %15 = vsyncpa [#allocation7 + $0x1], 0 }
   0x7   :  { %16 = vsyncpa [#allocation10], 0 }
   0x8   :  { %18 = vsyncpa [#allocation10 + $0x1], 0 }
   0x9   :  { %19 = vsyncpa [#allocation13], 0 }
   0xa   :  { %20 = vsyncpa [#allocation16], 0 }
   0xb   :  { %21 = vsyncpa [#allocation8], 0 }
   0xc   :  { %23 = vsyncpa [#allocation8 + $0x1], 0  ;;  %s2176_s27 = smov 0   ;;  %s2178_s28 = smov 0  }
   0xd   :  { %s2180_s29 = smov 0   ;;  %s2182_s30 = smov 0  }
   0xe   :  { %s2184_s9 = smov 0   ;;  %s2186_s10 = smov 0  }
   0xf LB: > { %2732 = sst [smem:[#allocation23_spill]] %s2090_s27  ;;  %s2207_s11 = sadd.s32 4294967295, %s2110_s10   ;;  %s2110_s10 = sphi %s2186_s10, %s29_s10   ;;  %s2106_s9 = sphi %s2184_s9, %s2777_s9   ;;  %s2102_s30 = sphi %s2182_s30, %s2776_s30   ;;  %s2098_s29 = sphi %s2180_s29, %s2780_s29   ;;  %s2094_s28 = sphi %s2178_s28, %s2779_s28   ;;  %s2090_s27 = sphi %s2176_s27, %s2778_s27  }
  0x10   : > { %2733 = sst [smem:[#allocation24_spill]] %s2102_s30  ;;  %s1525_s12 = sadd.s32 4294967294, %s2110_s10  }
  0x11   : > { %2734 = sst [smem:[#allocation25_spill]] %s2106_s9  ;;  %p70_p0 = scmp.ne.s32.totalorder %s2094_s28, %s2090_s27 }
  0x12   : > { %2735 = sst [smem:[#allocation26_spill]] %s2110_s10  ;;  %p2702_p1 = scmp.eq.s32.totalorder %s2207_s11, 0 }
  0x13   : > { %p263_p3 = scmp.eq.s32.totalorder %s1525_s12, 1  ;;  %p1526_p5 = scmp.ge.s32.totalorder %s2110_s10, 1 }
  0x14   : > { %p2216_p4 = por %p2702_p1, %p70_p0  ;;  %p270_p7 = scmp.lt.s32.totalorder %s2110_s10, 3 }
  0x15   : > { %p2221_p6 = por %p263_p3, %p70_p0  ;;  %s2112_s16 = smov [#allocation12]  }
  0x16   : > { %s2736_s13 = scalar_select %p2216_p4, 1, 0 }
  0x17   : > { %s2737_s14 = scalar_select %p2221_p6, 1, 0 }
  0x18   : > { %p2226_p8 = pnand %p1526_p5, %p270_p7  ;;  %s282_s17 = sshll.u32 %s2112_s16, 4  ;;  %s283_s17 = int_to_ptr.vmem [resolvable:$true] %s282_s17 }
  0x19   : > { %2738 = sst [smem:[#allocation27_spill]] %s2737_s14  ;;  %s48_s19 = sadd.s32 1, %s2106_s9 }
  0x1a   : > { %s2739_s15 = scalar_select %p2226_p8, 1, 0 }
  0x1b   : > { %p1698_p9 = pneg %p2226_p8  ;;  %s2741_s3 = sld [smem:[#allocation32_spill]] }
  0x1d   : > { %p2235_p11 = pnand %p1698_p9, %p2702_p1 }
  0x1f   : > { %s2740_s18 = scalar_select %p2235_p11, 1, 0 }
  0x20   : > { %p2248_p13 = pneg %p2235_p11 }
  0x21   : > { %s1842_s22 = scalar_lea.hbm %s2741_s3, 256 }
  0x22   : > { %p1843_p12 = scmp.ne.s32.totalorder %s2741_s3, %s1842_s22  ;;  %p1849_p5 = scmp.lt.u32.totalorder %s1842_s22, %s2741_s3 }
  0x23   : > { %s2742_s25 = scalar_select %p2248_p13, 1, 0 }
  0x24   : > { %p1845_p0 = pnand %p2248_p13, %p1843_p12 }
  0x26   : > { %p1846_p3 = pneg %p1845_p0 }
  0x28   : > { %p1851_p7 = pnand %p1849_p5, %p1846_p3 }
  0x2a   : > { %1854 = shalt.err (!%p1851_p7)
}
  0x2b   : > { %s1855_s16 = scalar_lea.vmem %s283_s17, 256  ;;  %p1863_p2 = scmp.lt.s32.totalorder %s283_s17, %s283_s17 }
  0x2c   : > { %p1856_p9 = scmp.ne.s32.totalorder %s283_s17, %s1855_s16  ;;  %p1864_p6 = scmp.lt.s32.totalorder %s1855_s16, %s1855_s16 }
  0x2e   : > { %p1858_p10 = pnand %p1856_p9, %p2248_p13  ;;  %p1865_p4 = por %p1864_p6, %p1863_p2 }
  0x30   : > { %p1859_p1 = pneg %p1858_p10 }
  0x32   : > { %p1866_p8 = pnand %p1865_p4, %p1859_p1 }
  0x34   : > { %1869 = shalt.err (!%p1866_p8)
}
  0x35   : > { %s2705_s20 = smov 64   ;;  %s2707_s21 = smov 4  }
  0x36   : > { %1701 = dma.hbm_to_vmem [thread:$0]  (!%p2235_p11), %s2741_s3, 256, %s283_s17, [#allocation13], %s2705_s20, %s2705_s20, %s2707_s21  }
  0x37   : > { %p50_p1 = scmp.ge.s32.totalorder %s48_s19, 2  ;;  %s57_s24 = sadd.s32 1, %s2098_s29 }
  0x38   : > { %p64_p2 = scmp.ne.s32.totalorder %s2098_s29, %s2094_s28  ;;  %p65_p4 = scmp.eq.s32.totalorder %s2110_s10, 0 }
  0x39   : > { %s2782_s19 = smov (%p50_p1, %s48_s19), 0  ;;  %p2744_p8 = scmp.eq.s32.totalorder %s2207_s11, 1 }
  0x3a   : > { %2743 = sst [smem:[#allocation28_spill]] %s2782_s19  ;;  %p66_p6 = por %p65_p4, %p64_p2 }
  0x3b   : > { %p2275_p10 = por %p2744_p8, %p64_p2  ;;  %s52_s12 = ssub.s32 %s2106_s9, %s2782_s19 }
  0x3c   : > { %p1725_p12 = scmp.lt.s32.totalorder %s2110_s10, 2  ;;  %p55_p0 = scmp.eq.s32.totalorder %s52_s12, 0 }
  0x3d   : > { %s2745_s26 = scalar_select %p2275_p10, 1, 0 }
  0x3e   : > { %s2710_s16 = sand.u32 1, %s2098_s29   ;;  %s2288_s22 = sshll.u32 %s2106_s9, 7 }
  0x3f   : > { %2746 = sst [smem:[#allocation29_spill]] %s2745_s26  ;;  %s2285_s17 = sshll.u32 %s2710_s16, 3 }
  0x40   : > { %s2291_s23 = scalar_select %p55_p0, %s2098_s29, %s57_s24  }
  0x41   : > { %p2293_p3 = pnand %p1725_p12, %p66_p6  ;;  %s347_s21 = sand.u32 1, %s2110_s10  }
  0x42   : > { %2747 = sst [smem:[#allocation30_spill]] %s2291_s23  ;;  %s2749_s1 = sld [smem:[#allocation31_spill]] }
  0x43   : > { %s2748_s20 = scalar_select %p2293_p3, 1, 0 }
  0x44   : > { %s351_s16 = scalar_lea.vmem [#allocation9], %s2285_s17  ;;  %s2115_s24 = smov [#allocation14]  }
  0x45   : > { %s359_s9 = sshll.u32 %s351_s16, 4  ;;  %s2307_s23 = sshll.u32 %s2115_s24, 4  ;;  %s2305_s9 = int_to_ptr.vmem [resolvable:$true] %s359_s9  ;;  %s296_s23 = int_to_ptr.vmem [resolvable:$true] %s2307_s23 }
  0x46   : > { %s2309_s14 = scalar_lea.sflag [#allocation10], %s347_s21  ;;  %p2315_p7 = pneg %p2293_p3 }
  0x48   : > { %s2302_s12 = scalar_lea.hbm %s2749_s1, %s2288_s22  ;;  %s1875_s10 = scalar_lea.hbm %s2749_s1, 256 }
  0x49   : > { %s1870_s27 = scalar_lea.hbm %s2302_s12, 128  ;;  %p1876_p2 = scmp.lt.u32.totalorder %s2302_s12, %s2749_s1 }
  0x4a   : > { %p1871_p5 = scmp.ne.s32.totalorder %s2302_s12, %s1870_s27  ;;  %p1877_p4 = scmp.lt.u32.totalorder %s1875_s10, %s1870_s27 }
  0x4b   : > { %s2750_s3 = scalar_select %p2315_p7, 1, 0 }
  0x4c   : > { %p1873_p9 = pnand %p2315_p7, %p1871_p5  ;;  %p1878_p6 = por %p1877_p4, %p1876_p2 }
  0x4d   : > { %p1879_p8 = scmp.lt.u32.totalorder %s1870_s27, %s2302_s12 }
  0x4e   : > { %p1874_p1 = pneg %p1873_p9 }
  0x4f   : > { %p1880_p12 = por %p1879_p8, %p1878_p6 }
  0x51   : > { %p1881_p0 = pnand %p1880_p12, %p1874_p1 }
  0x53   : > { %1884 = shalt.err (!%p1881_p0)
}
  0x54   : > { %s1885_s21 = scalar_lea.vmem %s2305_s9, 128  ;;  %s2116_s19 = smov [#allocation9]  }
  0x55   : > { %p1886_p5 = scmp.ne.s32.totalorder %s2305_s9, %s1885_s21  ;;  %s1890_s16 = sshll.u32 %s2116_s19, 4  ;;  %s1891_s16 = int_to_ptr.vmem [resolvable:$false] %s1890_s16 }
  0x56   : > { %s1892_s8 = scalar_lea.vmem %s1891_s16, 256  ;;  %p1893_p11 = scmp.lt.s32.totalorder %s2305_s9, %s1891_s16 }
  0x57   : > { %p1888_p9 = pnand %p1886_p5, %p2315_p7  ;;  %p1894_p13 = scmp.lt.s32.totalorder %s1892_s8, %s1885_s21 }
  0x59   : > { %p1889_p10 = pneg %p1888_p9  ;;  %p1895_p2 = por %p1894_p13, %p1893_p11 }
  0x5b   : > { %p1896_p4 = pnand %p1895_p2, %p1889_p10 }
  0x5d   : > { %1899 = shalt.err (!%p1896_p4)
}
  0x5e   : > { %1714 = dma.hbm_to_vmem [thread:$0]  (!%p2293_p3), %s2302_s12, 128, %s2305_s9, %s2309_s14  }
  0x5f   : > { %s1900_s24 = scalar_lea.hbm %s2697_s4, 256  ;;  %p2751_p11 = scmp.ne.s32.totalorder %s2742_s25, 0 }
  0x60   : > { %p1901_p1 = scmp.ne.s32.totalorder %s2697_s4, %s1900_s24  ;;  %p1907_p6 = scmp.lt.u32.totalorder %s1900_s24, %s2697_s4 }
  0x62   : > { %p1903_p13 = pnand %p1901_p1, %p2751_p11 }
  0x64   : > { %p1904_p10 = pneg %p1903_p13 }
  0x66   : > { %p1909_p8 = pnand %p1907_p6, %p1904_p10 }
  0x68   : > { %1912 = shalt.err (!%p1909_p8)
}
  0x69   : > { %s1913_s8 = scalar_lea.vmem %s296_s23, 256  ;;  %p1921_p9 = scmp.lt.s32.totalorder %s296_s23, %s296_s23 }
  0x6a   : > { %p1914_p12 = scmp.ne.s32.totalorder %s296_s23, %s1913_s8  ;;  %p1922_p2 = scmp.lt.s32.totalorder %s1913_s8, %s1913_s8 }
  0x6c   : > { %p1916_p0 = pnand %p1914_p12, %p2751_p11  ;;  %p1923_p4 = por %p1922_p2, %p1921_p9 }
  0x6e   : > { %p1917_p5 = pneg %p1916_p0 }
  0x70   : > { %p1924_p3 = pnand %p1923_p4, %p1917_p5 }
  0x72   : > { %1927 = shalt.err (!%p1924_p3)
}
  0x73   : > { %p2752_p1 = scmp.ne.s32.totalorder %s2740_s18, 0  ;;  %s2753_s1 = smov 4  }
  0x74   : > { %s2754_s9 = smov 64   ;;  %s2117_s10 = smov [#allocation15]  }
  0x75   : > { %1704 = dma.hbm_to_vmem [thread:$0]  (!%p2752_p1), %s2697_s4, 256, %s296_s23, [#allocation13], %s2754_s9, %s2754_s9, %s2753_s1  }
  0x76   : > { %s311_s24 = sshll.u32 %s2117_s10, 4  ;;  %s1928_s16 = scalar_lea.hbm %s2699_s6, 256  ;;  %s312_s24 = int_to_ptr.vmem [resolvable:$true] %s311_s24 }
  0x77   : > { %p1929_p3 = scmp.ne.s32.totalorder %s2699_s6, %s1928_s16  ;;  %p1935_p6 = scmp.lt.u32.totalorder %s1928_s16, %s2699_s6 }
  0x79   : > { %p1931_p13 = pnand %p1929_p3, %p2751_p11 }
  0x7b   : > { %p1932_p10 = pneg %p1931_p13 }
  0x7d   : > { %p1937_p8 = pnand %p1935_p6, %p1932_p10 }
  0x7f   : > { %1940 = shalt.err (!%p1937_p8)
}
  0x80   : > { %s1941_s23 = scalar_lea.vmem %s312_s24, 256  ;;  %p1949_p9 = scmp.lt.s32.totalorder %s312_s24, %s312_s24 }
  0x81   : > { %p1942_p12 = scmp.ne.s32.totalorder %s312_s24, %s1941_s23  ;;  %p1950_p2 = scmp.lt.s32.totalorder %s1941_s23, %s1941_s23 }
  0x83   : > { %p1944_p0 = pnand %p1942_p12, %p2751_p11  ;;  %p1951_p4 = por %p1950_p2, %p1949_p9 }
  0x85   : > { %p1945_p5 = pneg %p1944_p0 }
  0x87   : > { %p1952_p7 = pnand %p1951_p4, %p1945_p5 }
  0x89   : > { %1955 = shalt.err (!%p1952_p7)
}
  0x8a   : > { %1707 = dma.hbm_to_vmem [thread:$0]  (!%p2752_p1), %s2699_s6, 256, %s312_s24, [#allocation16], %s2754_s9, %s2754_s9, %s2753_s1  }
  0x8b   : > { %s2386_s12 = scalar_lea.hbm %s2693_s0, %s2288_s22  ;;  %s332_s18 = scalar_lea.vmem [#allocation6], %s2285_s17 }
  0x8c   : > { %s340_s27 = sshll.u32 %s332_s18, 4  ;;  %s2755_s10 = sand.u32 1, %s2098_s29   ;;  %s341_s27 = int_to_ptr.vmem [resolvable:$true] %s340_s27 }
  0x8d   : > { %s329_s19 = scalar_lea.sflag [#allocation7], %s2755_s10  ;;  %s1956_s21 = scalar_lea.hbm %s2386_s12, 128 }
  0x8e   : > { %p1957_p7 = scmp.ne.s32.totalorder %s2386_s12, %s1956_s21  ;;  %p2756_p11 = scmp.ne.s32.totalorder %s2750_s3, 0 }
  0x8f   : > { %s1961_s24 = scalar_lea.hbm %s2693_s0, 256  ;;  %p1962_p1 = scmp.lt.u32.totalorder %s2386_s12, %s2693_s0 }
  0x90   : > { %p1959_p3 = pnand %p1957_p7, %p2756_p11  ;;  %p1963_p10 = scmp.lt.u32.totalorder %s1961_s24, %s1956_s21 }
  0x91   : > { %p1965_p8 = scmp.lt.u32.totalorder %s1956_s21, %s2386_s12 }
  0x92   : > { %p1960_p13 = pneg %p1959_p3  ;;  %p1964_p6 = por %p1963_p10, %p1962_p1 }
  0x94   : > { %p1966_p12 = por %p1965_p8, %p1964_p6 }
  0x96   : > { %p1967_p0 = pnand %p1966_p12, %p1960_p13 }
  0x98   : > { %1970 = shalt.err (!%p1967_p0)
}
  0x99   : > { %s1971_s23 = scalar_lea.vmem %s341_s27, 128  ;;  %s2118_s7 = smov [#allocation6]  }
  0x9a   : > { %p1972_p5 = scmp.ne.s32.totalorder %s341_s27, %s1971_s23  ;;  %s1976_s30 = sshll.u32 %s2118_s7, 4  ;;  %s1977_s30 = int_to_ptr.vmem [resolvable:$false] %s1976_s30 }
  0x9b   : > { %s1978_s25 = scalar_lea.vmem %s1977_s30, 256  ;;  %p1979_p4 = scmp.lt.s32.totalorder %s341_s27, %s1977_s30 }
  0x9c   : > { %p1974_p9 = pnand %p1972_p5, %p2756_p11  ;;  %p1980_p7 = scmp.lt.s32.totalorder %s1978_s25, %s1971_s23 }
  0x9e   : > { %p1975_p2 = pneg %p1974_p9  ;;  %p1981_p3 = por %p1980_p7, %p1979_p4 }
  0xa0   : > { %p1982_p1 = pnand %p1981_p3, %p1975_p2 }
  0xa2   : > { %1985 = shalt.err (!%p1982_p1)
}
  0xa3   : > { %p2757_p10 = scmp.ne.s32.totalorder %s2748_s20, 0  ;;  %s2412_s10 = scalar_lea.hbm %s2695_s2, %s2288_s22 }
  0xa4   : > { %s370_s21 = scalar_lea.vmem [#allocation11], %s2285_s17  ;;  %s1986_s9 = scalar_lea.hbm %s2412_s10, 128 }
  0xa5   : > { %1711 = dma.hbm_to_vmem [thread:$0]  (!%p2757_p10), %s2386_s12, 128, %s341_s27, %s329_s19  }
  0xa6   : > { %s378_s1 = sshll.u32 %s370_s21, 4  ;;  %p1987_p13 = scmp.ne.s32.totalorder %s2412_s10, %s1986_s9  ;;  %s379_s1 = int_to_ptr.vmem [resolvable:$true] %s378_s1 }
  0xa7   : > { %s1991_s12 = scalar_lea.hbm %s2695_s2, 256  ;;  %p1992_p12 = scmp.lt.u32.totalorder %s2412_s10, %s2695_s2 }
  0xa8   : > { %p1989_p6 = pnand %p1987_p13, %p2756_p11  ;;  %p1993_p0 = scmp.lt.u32.totalorder %s1991_s12, %s1986_s9 }
  0xa9   : > { %p1995_p9 = scmp.lt.u32.totalorder %s1986_s9, %s2412_s10 }
  0xaa   : > { %p1990_p8 = pneg %p1989_p6  ;;  %p1994_p5 = por %p1993_p0, %p1992_p12 }
  0xac   : > { %p1996_p2 = por %p1995_p9, %p1994_p5 }
  0xae   : > { %p1997_p4 = pnand %p1996_p2, %p1990_p8 }
  0xb0   : > { %2000 = shalt.err (!%p1997_p4)
}
  0xb1   : > { %s2001_s17 = scalar_lea.vmem %s379_s1, 128  ;;  %s2119_s22 = smov [#allocation11]  }
  0xb2   : > { %p2002_p7 = scmp.ne.s32.totalorder %s379_s1, %s2001_s17  ;;  %s2006_s8 = sshll.u32 %s2119_s22, 4  ;;  %s2007_s8 = int_to_ptr.vmem [resolvable:$false] %s2006_s8 }
  0xb3   : > { %s2008_s23 = scalar_lea.vmem %s2007_s8, 256  ;;  %p2009_p13 = scmp.lt.s32.totalorder %s379_s1, %s2007_s8 }
  0xb4   : > { %p2004_p3 = pnand %p2002_p7, %p2756_p11  ;;  %p2010_p6 = scmp.lt.s32.totalorder %s2008_s23, %s2001_s17 }
  0xb6   : > { %p2005_p1 = pneg %p2004_p3  ;;  %p2011_p10 = por %p2010_p6, %p2009_p13 }
  0xb8   : > { %p2012_p0 = pnand %p2011_p10, %p2005_p1 }
  0xba   : > { %2015 = shalt.err (!%p2012_p0)
}
  0xbb   : > { %p2758_p12 = scmp.ne.s32.totalorder %s2748_s20, 0  ;;  %p2759_p8 = scmp.ne.s32.totalorder %s2739_s15, 0 }
  0xbc   : > { %s2436_s3 = sand.u32 (!%p2759_p8), 1, %s2094_s28   ;;  %p2760_p11 = scmp.ne.s32.totalorder (!%p2759_p8), %s2736_s13, 0 }
  0xbd   : > { %1717 = dma.hbm_to_vmem [thread:$0]  (!%p2758_p12), %s2412_s10, 128, %s379_s1, %s2309_s14  }
  0xbe   : > { %387 = sbr.rel (%p2759_p8) target bundleno = 1707 (0x6ab), region = 52  ;;  %s2439_s7 = sshll.u32 (!%p2759_p8), %s2436_s3, 3 }
  0xbf   : > { %s390_s30 = scalar_lea.sflag (!%p2759_p8), [#allocation7], %s2436_s3  ;;  %s393_s25 = scalar_lea.vmem (!%p2759_p8), [#allocation6], %s2439_s7 }
  0xc5   : > { %2069 = dma.done.wait (%p2760_p11), %s390_s30, 128  }
  0xc6   : > { %2071 = vsyncadd (%p2760_p11), %s390_s30, 4294967168  ;;  %s398_s14 = sand.u32 1, %s2207_s11   ;;  %s402_s20 = scalar_lea.vmem [#allocation9], %s2439_s7 }
  0xc7   : > { %s399_s15 = scalar_lea.sflag [#allocation10], %s398_s14 }
  0xc8   : > { %2073 = dma.done.wait (%p2760_p11), %s399_s15, 256  }
  0xc9   : > { %2075 = vsyncadd (%p2760_p11), %s399_s15, 4294967040  ;;  %s411_s26 = scalar_lea.vmem [#allocation11], %s2439_s7  ;;  %p2761_p10 = scmp.eq.s32.totalorder %s2207_s11, 0 }
  0xcb   : > { %2077 = dma.done.wait (%p2761_p10), [#allocation13], 512   ;;  %p2762_p5 = pmov %p2761_p10 }
  0xcd   : > { %2079 = vsyncadd (%p2762_p5), [#allocation13], 4294966784  ;;  %p2763_p9 = pmov %p2762_p5 }
  0xce   : > { %p2764_p2 = pmov %p2762_p5 }
  0xcf   : > { %2081 = dma.done.wait (%p2763_p9), [#allocation16], 256  }
  0xd0   : > { %2083 = vsyncadd (%p2764_p2), [#allocation16], 4294967040  ;;  %v2120_v0 = vmov 0.0   ;;  %vm2121_vm0 = vmmov 0   ;;  %v1810_v1 = vld [vmem:[#allocation12] sm:$0xff]   ;;  %v1811_v2 = vld [vmem:[#allocation14] sm:$0xff]  }
  0xd1   : > { %1598 = vmatprep.subr.bf16.mxu0 %v2120_v0  ;;  %1606 = vmatprep.subr.bf16.mxu1 %v2120_v0  ;;  %v1812_v3 = vld [vmem:[#allocation12 + $0x8] sm:$0xff]   ;;  %v1813_v4 = vld [vmem:[#allocation14 + $0x8] sm:$0xff]   ;;  %vm503_vm1 = vcmask 261120   ;;  %vm480_vm2 = vcmask 64512   ;;  %v1814_v9 = vld [vmem:[%s2698_s5] sm:$0xff]   ;;  %vm561_vm3 = vcmask 60416  }
  0xd2   : > { %1602 = vmatprep.mubr.msk.bf16.mxu0 %vm2121_vm0, %v2120_v0  ;;  %1610 = vmatprep.mubr.msk.bf16.mxu1 %vm2121_vm0, %v2120_v0  ;;  %v485_v5 = vld [vmem:[%s393_s25] sm:$0xff]  ;;  %v566_v6 = vld [vmem:[%s402_s20] sm:$0xff]  ;;  %481 = vst.msk [vmem:[#allocation5] sm:$0xff] %vm480_vm2, %v2120_v0  ;;  %482 = vst.msk [vmem:[#allocation5 + $0x8] sm:$0xff] %vm480_vm2, %v2120_v0  ;;  %s2122_s21 = smov 104   ;;  %s2123_s1 = smov 120  }
  0xd3   : > { %1599 = vmatpush3.bf16.msra.mxu0 %v1810_v1  ;;  %1607 = vmatpush3.bf16.msra.mxu1 %v1811_v2  ;;  %v486_v7 = vpack.c.bf16 %v485_v5, %v485_v5  ;;  %v567_v8 = vpack.c.bf16 %v566_v6, %v566_v6  ;;  %483 = vst.msk [vmem:[#allocation5 + $0x10] sm:$0xff] %vm480_vm2, %v2120_v0  ;;  %484 = vst.msk [vmem:[#allocation5 + $0x18] sm:$0xff] %vm480_vm2, %v2120_v0  ;;  %v1815_v10 = vld [vmem:[%s2698_s5 + $0x8] sm:$0xff]   ;;  %v642_v11 = vld [vmem:[%s411_s26] sm:$0xff]  ;;  %s2124_s9 = smov 112   ;;  %vm1034_vm4 = vcmask 1043456  }
  0xd4   : > { %1600 = vmatprep.subr.bf16.mxu0 %v2120_v0  ;;  %1608 = vmatprep.subr.bf16.mxu1 %v2120_v0  ;;  %v643_v12 = vpack.c.bf16 %v642_v11, %v642_v11  ;;  %vm471_vm5 = vcmask 7168   ;;  %v2125_v58 = vmov -inf   ;;  %v2126_v59 = vmov 0   ;;  %s2127_s24 = smov 8   ;;  %s2128_s16 = smov 16  }
  0xd5   : > { %472 = vst.msk [vmem:[#allocation3] sm:$0xff] %vm471_vm5, %v2125_v58  ;;  %473 = vst.msk [vmem:[#allocation3 + $0x8] sm:$0xff] %vm471_vm5, %v2125_v58  ;;  %1808 = vset.pattern.permute.xlu0 %v2126_v59  ;;  %1809 = vset.pattern.permute.xlu1 %v2126_v59  ;;  %s2129_s12 = smov 24   ;;  %s2765_s27 = sld [smem:[#allocation24_spill]]  ;;  %vm1280_vm6 = vcmask 130048   ;;  %vm1282_vm7 = vcmask 195584  }
  0xd6   : > { %474 = vst.msk [vmem:[#allocation3 + $0x10] sm:$0xff] %vm471_vm5, %v2125_v58  ;;  %475 = vst.msk [vmem:[#allocation3 + $0x18] sm:$0xff] %vm471_vm5, %v2125_v58  ;;  %s2766_s22 = sld [smem:[#allocation33_spill]]  ;;  %s2767_s8 = sld [smem:[#allocation29_spill]] }
  0xd7   : > { %1601 = vmatpush3.bf16.msra.mxu0 %v1812_v3  ;;  %1609 = vmatpush3.bf16.msra.mxu1 %v1813_v4  ;;  %476 = vst.msk [vmem:[#allocation4] sm:$0xff] %vm471_vm5, %v2120_v0  ;;  %477 = vst.msk [vmem:[#allocation4 + $0x8] sm:$0xff] %vm471_vm5, %v2120_v0  ;;  %s465_s30 = scalar_lea.vmem [#allocation17], %s2439_s7  ;;  %s2768_s20 = sld [smem:[#allocation34_spill]] }
  0xd8   : > { %1614 = vmatprep.subr.bf16.mxu0 %v2120_v0  ;;  %1622 = vmatprep.subr.bf16.mxu1 %v2120_v0  ;;  %478 = vst.msk [vmem:[#allocation4 + $0x10] sm:$0xff] %vm471_vm5, %v2120_v0  ;;  %479 = vst.msk [vmem:[#allocation4 + $0x18] sm:$0xff] %vm471_vm5, %v2120_v0  ;;  %s1367_s25 = sshll.u32 %s465_s30, 4  ;;  %s1353_s11 = scalar_lea.sflag [#allocation8], %s2436_s3  ;;  %s2645_s25 = int_to_ptr.vmem [resolvable:$true] %s1367_s25 }
  0xd9   : > { %s2016_s7 = scalar_lea.vmem %s2645_s25, 128  ;;  %s2130_s13 = smov [#allocation17]  }
  0xda   : > { %1603 = vmatmul.mubr.msk.bf16.vlgmr.msra.gmra.mrb[0].mxu0 %vm503_vm1, %v486_v7  ;;  %1611 = vmatmul.mubr.msk.bf16.vlgmr.msra.gmra.mrb[0].mxu1 %vm503_vm1, %v567_v8  ;;  %p2017_p4 = scmp.ne.s32.totalorder %s2645_s25, %s2016_s7  ;;  %s2020_s18 = sshll.u32 %s2130_s13, 4  ;;  %s2021_s18 = int_to_ptr.vmem [resolvable:$false] %s2020_s18 }
  0xdb   : > { %1618 = vmatprep.mubr.msk.bf16.mxu0 %vm2121_vm0, %v2120_v0  ;;  %1624 = vmatprep.mubr.msk.bf16.mxu1 %vm2121_vm0, %v2120_v0  ;;  %s1567_s23 = sshll.u32 %s2765_s27, 7  ;;  %s2022_s10 = scalar_lea.vmem %s2021_s18, 256 }
  0xdc   : > { %1615 = vmatpush3.bf16.msra.mxu0 %v1814_v9  ;;  %p2769_p7 = scmp.ne.s32.totalorder %s2767_s8, 0  ;;  %p2023_p13 = scmp.lt.s32.totalorder %s2645_s25, %s2021_s18 }
  0xdd   : > { %1616 = vmatprep.subr.bf16.mxu0 %v2120_v0  ;;  %s2643_s26 = scalar_lea.hbm %s2768_s20, %s1567_s23  ;;  %p2024_p6 = scmp.lt.s32.totalorder %s2022_s10, %s2016_s7 }
  0xde   : > { %p2018_p3 = pnand %p2017_p4, %p2769_p7 }
  0xdf   : > { %p2025_p0 = por %p2024_p6, %p2023_p13 }
  0xe0   : > { %1617 = vmatpush3.bf16.msra.mxu0 %v1815_v10  ;;  %p2019_p1 = pneg %p2018_p3 }
  0xe1   : > { %1628 = vmatprep.subr.bf16.mxu0 %v2120_v0 }
  0xe2   : > { %p2026_p12 = pnand %p2025_p0, %p2019_p1 }
  0xe3   : > { %1619 = vmatmul.mubr.msk.bf16.vlgmr.msra.gmra.mrb[4].mxu0 %vm503_vm1, %v643_v12  ;;  %v2551_v12 = vld [vmem:[#allocation3] sm:$0xff] }
  0xe4   : > { %1630 = vmatprep.mubr.msk.bf16.mxu0 %vm2121_vm0, %v2120_v0 }
 0x1ad   : > { %v541_v13 = vpop.f32.mrb[0].mxu0  ;;  %v622_v15 = vpop.f32.mrb[0].mxu1 }
 0x1ae   : > { %v557_v14 = vpack.c.bf16 %v541_v13, %v541_v13  ;;  %v1604_v16 = vpop.f32.mrb[1].mxu0  ;;  %v1612_v17 = vpop.f32.mrb[1].mxu1  ;;  %v1803_v19 = vpack.i.bf16 %v622_v15, %v541_v13  ;;  %v638_v20 = vpack.c.bf16 %v622_v15, %v622_v15 }
 0x1af   : > { %v544_v18 = vpop.f32.mrb[2].mxu0  ;;  %v625_v21 = vpop.f32.mrb[2].mxu1  ;;  %v2561_v16 = vld [vmem:[#allocation3 + $0x8] sm:$0xff] }
 0x1b0   : > { %562 = vst.msk [vmem:[#allocation2] sm:$0xf] %vm561_vm3, %v557_v14  ;;  %v1605_v22 = vpop.f32.mrb[3].mxu0  ;;  %v1613_v23 = vpop.f32.mrb[3].mxu1  ;;  %1804 = vrot.lane.b32.xlu1 %v1803_v19, %s2122_s21  ;;  %1794 = vrot.lane.b32.xlu0 %v1803_v19, %s2123_s1  ;;  %v726_v24 = vsel %vm480_vm2, %v638_v20, 0 }
 0x1b1   : > { %1623 = vmatpush3.bf16.xpose.msra.mxu1 %v726_v24  ;;  %v2576_v23 = vld [vmem:[#allocation3 + $0x18] sm:$0xff] }
 0x1b2   : > { %1634 = vmatprep.subr.bf16.mxu1 %v2120_v0 }
 0x1b4   : > { %1799 = vrot.lane.b32.xlu0 %v1803_v19, %s2124_s9  ;;  %v2566_v19 = vld [vmem:[#allocation3 + $0x10] sm:$0xff] }
 0x1b6   : > { %v2526_v47 = vpop.f32.mrb[4].mxu0 }
 0x1b7   : > { %v717_v25 = vld [vmem:[#allocation2] sm:$0xf]  ;;  %v1620_v48 = vpop.f32.mrb[5].mxu0  ;;  %v713_v49 = vpack.c.bf16 %v2526_v47, %v2526_v47 }
 0x1b8   : > { %1625 = vmatmul.mubr.msk.bf16.vlgmr.msra.gmra.mrb[4].mxu1 %vm480_vm2, %v717_v25  ;;  %v700_v50 = vpop.f32.mrb[6].mxu0 }
 0x1b9   : > { %1636 = vmatprep.mubr.msk.bf16.mxu1 %vm2121_vm0, %v2120_v0  ;;  %v1621_v51 = vpop.f32.mrb[7].mxu0  ;;  %v1036_v52 = vsel %vm1034_vm4, %v713_v49, 0 }
 0x222   : > { %v1805_v26 = vpop.permute.xlu1 %1804  ;;  %v1795_v27 = vpop.permute.xlu0 %1794 }
 0x223   : > { %v1806_v28 = vunpack.i.l.bf16 %v1805_v26  ;;  %v1797_v29 = vunpack.i.h.bf16 %v1795_v27  ;;  %v1796_v30 = vunpack.i.l.bf16 %v1795_v27  ;;  %v1807_v35 = vunpack.i.h.bf16 %v1805_v26 }
 0x225   : > { %v560_v31 = vpack.c.bf16 %v1806_v28, %v1806_v28  ;;  %v639_v32 = vpack.c.bf16 %v1797_v29, %v1797_v29  ;;  %v558_v33 = vpack.c.bf16 %v1796_v30, %v1796_v30  ;;  %v641_v41 = vpack.c.bf16 %v1807_v35, %v1807_v35 }
 0x226   : > { %v1800_v34 = vpop.permute.xlu0 %1799 }
 0x227   : > { %565 = vst.msk [vmem:[#allocation2 + $0xc] sm:$0xf] %vm561_vm3, %v560_v31  ;;  %563 = vst.msk [vmem:[#allocation2 + $0x4] sm:$0xf] %vm561_vm3, %v558_v33  ;;  %v1802_v36 = vunpack.i.h.bf16 %v1800_v34  ;;  %v1801_v37 = vunpack.i.l.bf16 %v1800_v34  ;;  %v772_v38 = vsel %vm480_vm2, %v639_v32, 0  ;;  %v864_v44 = vsel %vm480_vm2, %v641_v41, 0 }
 0x228   : > { %1629 = vmatpush3.bf16.xpose.msra.mxu0 %v772_v38 }
 0x229   : > { %v640_v39 = vpack.c.bf16 %v1802_v36, %v1802_v36  ;;  %v559_v40 = vpack.c.bf16 %v1801_v37, %v1801_v37  ;;  %1640 = vmatprep.subr.bf16.mxu0 %v2120_v0 }
 0x22b   : > { %564 = vst.msk [vmem:[#allocation2 + $0x8] sm:$0xf] %vm561_vm3, %v559_v40  ;;  %v818_v42 = vsel %vm480_vm2, %v640_v39, 0 }
 0x22c   : > { %1635 = vmatpush3.bf16.xpose.msra.mxu1 %v818_v42 }
 0x22d   : > { %1646 = vmatprep.subr.bf16.mxu1 %v2120_v0 }
 0x22e   : > { %v718_v43 = vld [vmem:[#allocation2 + $0x4] sm:$0xf]  ;;  %v720_v46 = vld [vmem:[#allocation2 + $0xc] sm:$0xf] }
 0x22f   : > { %1631 = vmatmul.mubr.msk.bf16.vlgmr.msra.gmra.mrb[8].mxu0 %vm480_vm2, %v718_v43 }
 0x230   : > { %1641 = vmatpush3.bf16.xpose.msra.mxu0 %v864_v44  ;;  %1642 = vmatprep.mubr.msk.bf16.mxu0 %vm2121_vm0, %v2120_v0 }
 0x231   : > { %1652 = vmatprep.subr.bf16.mxu0 %v2120_v0 }
 0x232   : > { %v719_v45 = vld [vmem:[#allocation2 + $0x8] sm:$0xf] }
 0x233   : > { %1637 = vmatmul.mubr.msk.bf16.vlgmr.msra.gmra.mrb[8].mxu1 %vm480_vm2, %v719_v45 }
 0x234   : > { %1648 = vmatprep.mubr.msk.bf16.mxu1 %vm2121_vm0, %v2120_v0  ;;  %1647 = vmatpush3.bf16.msra.mxu1 %v1036_v52 }
 0x235   : > { %1658 = vmatprep.subr.bf16.mxu1 %v2120_v0 }
 0x237   : > { %1643 = vmatmul.mubr.msk.bf16.vlgmr.msra.gmra.mrb[12].mxu0 %vm480_vm2, %v720_v46 }
 0x238   : > { %1654 = vmatprep.mubr.msk.bf16.mxu0 %vm2121_vm0, %v2120_v0 }
 0x28b   : > { %v2532_v53 = vpop.f32.mrb[4].mxu1 }
 0x28c   : > { %v1626_v54 = vpop.f32.mrb[5].mxu1  ;;  %v910_v55 = vsel %vm480_vm2, %v2532_v53, -inf }
 0x28d   : > { %911 = vmax.xlane.f32.xlu1 %v910_v55  ;;  %v765_v56 = vpop.f32.mrb[6].mxu1 }
 0x28e   : > { %v1627_v57 = vpop.f32.mrb[7].mxu1 }
 0x302   : > { %v808_v60 = vpop.f32.mrb[8].mxu0 }
 0x303   : > { %v1632_v61 = vpop.f32.mrb[9].mxu0  ;;  %v913_v62 = vsel %vm480_vm2, %v808_v60, -inf }
 0x304   : > { %914 = vmax.xlane.f32.xlu0 %v913_v62  ;;  %v811_v63 = vpop.f32.mrb[10].mxu0 }
 0x305   : > { %v1633_v1 = vpop.f32.mrb[11].mxu0 }
 0x306   : > { %v854_v2 = vpop.f32.mrb[8].mxu1 }
 0x307   : > { %v1638_v3 = vpop.f32.mrb[9].mxu1  ;;  %v916_v4 = vsel %vm480_vm2, %v854_v2, -inf }
 0x308   : > { %v857_v5 = vpop.f32.mrb[10].mxu1  ;;  %917 = vmax.xlane.f32.xlu0 %v916_v4 }
 0x309   : > { %v1639_v6 = vpop.f32.mrb[11].mxu1 }
 0x30a   : > { %v900_v7 = vpop.f32.mrb[12].mxu0 }
 0x30b   : > { %v1644_v8 = vpop.f32.mrb[13].mxu0  ;;  %v919_v9 = vsel %vm480_vm2, %v900_v7, -inf }
 0x30c   : > { %920 = vmax.xlane.f32.xlu1 %v919_v9  ;;  %v903_v10 = vpop.f32.mrb[14].mxu0  ;;  %v971_v9 = vld [vmem:[#allocation4 + $0x8] sm:$0xff] }
 0x30d   : > { %v1645_v11 = vpop.f32.mrb[15].mxu0 }
 0x31a   : > { %v912_v13 = vpop.xlane.xlu1 %911 }
 0x31b   : > { %v2554_v14 = vmax.f32 %v2551_v12, %v912_v13  ;;  %v972_v13 = vld [vmem:[#allocation4 + $0x10] sm:$0xff] }
 0x31d   : > { %v926_v15 = vsub.f32 %v2551_v12, %v2554_v14  ;;  %1224 = vst.msk [vmem:[#allocation3] sm:$0xff] %vm471_vm5, %v2554_v14 }
 0x31e   : > { %940 = vperm.xlu0 %1808, %v2554_v14  }
 0x31f   : > { %v930_v8 = vmul.f32 1.442695, %v926_v15 }
 0x391   : > { %v915_v17 = vpop.xlane.xlu0 %914 }
 0x392   : > { %v2564_v18 = vmax.f32 %v2561_v16, %v915_v17 }
 0x394   : > { %v927_v20 = vsub.f32 %v2561_v16, %v2564_v18  ;;  %1225 = vst.msk [vmem:[#allocation3 + $0x8] sm:$0xff] %vm471_vm5, %v2564_v18  ;;  %945 = vperm.xlu1 %1809, %v2564_v18  }
 0x395   : > { %v918_v21 = vpop.xlane.xlu0 %917 }
 0x396   : > { %v2574_v22 = vmax.f32 %v2566_v19, %v918_v21  ;;  %v932_v61 = vmul.f32 1.442695, %v927_v20  ;;  %v973_v20 = vld [vmem:[#allocation4 + $0x18] sm:$0xff]  ;;  %v970_v21 = vld [vmem:[#allocation4] sm:$0xff] }
 0x398   : > { %v928_v24 = vsub.f32 %v2566_v19, %v2574_v22  ;;  %1226 = vst.msk [vmem:[#allocation3 + $0x10] sm:$0xff] %vm471_vm5, %v2574_v22  ;;  %950 = vperm.xlu1 %1809, %v2574_v22  }
 0x399   : > { %v921_v25 = vpop.xlane.xlu1 %920 }
 0x39a   : > { %v925_v26 = vmax.f32 %v2576_v23, %v921_v25  ;;  %v934_v63 = vmul.f32 1.442695, %v928_v24 }
 0x39c   : > { %v929_v27 = vsub.f32 %v2576_v23, %v925_v26  ;;  %1227 = vst.msk [vmem:[#allocation3 + $0x18] sm:$0xff] %vm471_vm5, %v925_v26  ;;  %955 = vperm.xlu1 %1809, %v925_v26  }
 0x39d   : > { %v941_v28 = vpop.permute.xlu0 %940 }
 0x39e   : > { %v958_v29 = vsub.f32 %v2532_v53, %v941_v28  ;;  %v936_v62 = vmul.f32 1.442695, %v929_v27 }
 0x3a0   : > { %v962_v30 = vmul.f32 1.442695, %v958_v29  ;;  %704 = vrot.lane.b32.xlu1 %v2526_v47, %s2123_s1 }
 0x3a2   : > { %1818 = vpow2.f32 %v962_v30 }
 0x3a4   : > { %707 = vrot.lane.b32.xlu1 %v2526_v47, %s2124_s9 }
 0x3a8   : > { %710 = vrot.lane.b32.xlu1 %v2526_v47, %s2122_s21 }
 0x3ac   : > { %v1819_v31 = vpop.eup %1818 }
 0x3ad   : > { %v1027_v32 = vpack.c.bf16 %v1819_v31, %v1819_v31  ;;  %v978_v59 = vsel %vm480_vm2, %v1819_v31, 0.0 }
 0x3af   : > { %1649 = vmatmul.mubr.msk.bf16.vlgmr.msra.gmra.mrb[12].mxu1 %vm480_vm2, %v1027_v32 }
 0x3b0   : > { %1660 = vmatprep.mubr.msk.bf16.mxu1 %vm2121_vm0, %v2120_v0 }
 0x413   : > { %v946_v33 = vpop.permute.xlu1 %945 }
 0x414   : > { %v959_v34 = vsub.f32 %v808_v60, %v946_v33 }
 0x416   : > { %v964_v35 = vmul.f32 1.442695, %v959_v34  ;;  %v1000_v34 = vld [vmem:[#allocation5 + $0x8] sm:$0xff] }
 0x417   : > { %v951_v36 = vpop.permute.xlu1 %950 }
 0x418   : > { %1820 = vpow2.f32 %v964_v35  ;;  %v960_v37 = vsub.f32 %v854_v2, %v951_v36 }
 0x41a   : > { %v966_v38 = vmul.f32 1.442695, %v960_v37  ;;  %v1001_v37 = vld [vmem:[#allocation5 + $0x10] sm:$0xff] }
 0x41b   : > { %v956_v39 = vpop.permute.xlu1 %955 }
 0x41c   : > { %1822 = vpow2.f32 %v966_v38  ;;  %v961_v40 = vsub.f32 %v900_v7, %v956_v39 }
 0x41e   : > { %v968_v41 = vmul.f32 1.442695, %v961_v40 }
 0x41f   : > { %v705_v42 = vpop.permute.xlu1 %704 }
 0x420   : > { %1824 = vpow2.f32 %v968_v41  ;;  %v714_v43 = vpack.c.bf16 %v705_v42, %v705_v42 }
 0x421   : > { %1826 = vpow2.f32 %v932_v61 }
 0x422   : > { %v1821_v44 = vpop.eup %1820  ;;  %v1082_v45 = vsel %vm1034_vm4, %v714_v43, 0  ;;  %1828 = vpow2.f32 %v936_v62 }
 0x423   : > { %1653 = vmatpush3.bf16.msra.mxu0 %v1082_v45  ;;  %v708_v46 = vpop.permute.xlu1 %707  ;;  %v981_v47 = vsel %vm480_vm2, %v1821_v44, 0.0  ;;  %v1028_v48 = vpack.c.bf16 %v1821_v44, %v1821_v44  ;;  %1830 = vpow2.f32 %v934_v63  ;;  %v1002_v45 = vld [vmem:[#allocation5 + $0x18] sm:$0xff] }
 0x424   : > { %v715_v49 = vpack.c.bf16 %v708_v46, %v708_v46  ;;  %982 = vadd.xlane.f32.xlu1 %v981_v47  ;;  %1664 = vmatprep.subr.bf16.mxu0 %v2120_v0  ;;  %1832 = vpow2.f32 %v930_v8 }
 0x426   : > { %v1823_v50 = vpop.eup %1822  ;;  %v1128_v51 = vsel %vm1034_vm4, %v715_v49, 0  ;;  %1655 = vmatmul.mubr.msk.bf16.vlgmr.msra.gmra.mrb[16].mxu0 %vm480_vm2, %v1028_v48 }
 0x427   : > { %v711_v52 = vpop.permute.xlu1 %710  ;;  %1659 = vmatpush3.bf16.msra.mxu1 %v1128_v51  ;;  %v984_v53 = vsel %vm480_vm2, %v1823_v50, 0.0  ;;  %v1029_v54 = vpack.c.bf16 %v1823_v50, %v1823_v50  ;;  %1666 = vmatprep.mubr.msk.bf16.mxu0 %vm2121_vm0, %v2120_v0 }
 0x428   : > { %v716_v55 = vpack.c.bf16 %v711_v52, %v711_v52  ;;  %985 = vadd.xlane.f32.xlu0 %v984_v53  ;;  %1670 = vmatprep.subr.bf16.mxu1 %v2120_v0 }
 0x42a   : > { %v1825_v56 = vpop.eup %1824  ;;  %v1174_v57 = vsel %vm1034_vm4, %v716_v55, 0  ;;  %1661 = vmatmul.mubr.msk.bf16.vlgmr.msra.gmra.mrb[16].mxu1 %vm480_vm2, %v1029_v54 }
 0x42b   : > { %1665 = vmatpush3.bf16.msra.mxu0 %v1174_v57  ;;  %v987_v58 = vsel %vm480_vm2, %v1825_v56, 0.0  ;;  %v1030_v60 = vpack.c.bf16 %v1825_v56, %v1825_v56  ;;  %1674 = vmatprep.mubr.msk.bf16.mxu1 %vm2121_vm0, %v2120_v0  ;;  %v1827_v1 = vpop.eup %1826 }
 0x42c   : > { %988 = vadd.xlane.f32.xlu1 %v987_v58  ;;  %979 = vadd.xlane.f32.xlu0 %v978_v59  ;;  %v1829_v2 = vpop.eup %1828  ;;  %v975_v10 = vmul.f32 %v1827_v1, %v971_v9  ;;  %v1816_v58 = vld [vmem:[#allocation15] sm:$0xff]   ;;  %v1817_v59 = vld [vmem:[#allocation15 + $0x8] sm:$0xff]  }
 0x42d   : > { %v1831_v3 = vpop.eup %1830  ;;  %v977_v23 = vmul.f32 %v1829_v2, %v973_v20  ;;  %1671 = vmatpush3.bf16.msra.mxu1 %v1816_v58 }
 0x42e   : > { %1667 = vmatmul.mubr.msk.bf16.vlgmr.msra.gmra.mrb[20].mxu0 %vm480_vm2, %v1030_v60  ;;  %v976_v17 = vmul.f32 %v1831_v3, %v972_v13  ;;  %v1833_v18 = vpop.eup %1832  ;;  %1672 = vmatprep.subr.bf16.mxu1 %v2120_v0 }
 0x42f   : > { %v974_v24 = vmul.f32 %v1833_v18, %v970_v21 }
 0x431   : > { %1673 = vmatpush3.bf16.msra.mxu1 %v1817_v59 }
 0x43d   : > { %1010 = vperm.xlu1 %1809, %v1827_v1  }
 0x441   : > { %1020 = vperm.xlu1 %1809, %v1829_v2  }
 0x442   : > { %1015 = vperm.xlu0 %1808, %v1831_v3   ;;  %v999_v3 = vld [vmem:[#allocation5] sm:$0xff] }
 0x482   : > { %v2618_v4 = vpop.f32.mrb[12].mxu1 }
 0x483   : > { %v1650_v5 = vpop.f32.mrb[13].mxu1 }
 0x484   : > { %v1075_v6 = vpop.f32.mrb[14].mxu1 }
 0x485   : > { %v1651_v7 = vpop.f32.mrb[15].mxu1 }
 0x4b1   : > { %v983_v11 = vpop.xlane.xlu1 %982 }
 0x4b2   : > { %v991_v16 = vadd.f32 %v983_v11, %v975_v10 }
 0x4b4   : > { %996 = vst.msk [vmem:[#allocation4 + $0x8] sm:$0xff] %vm471_vm5, %v991_v16 }
 0x4b5   : > { %v986_v19 = vpop.xlane.xlu0 %985 }
 0x4b6   : > { %v992_v22 = vadd.f32 %v986_v19, %v976_v17 }
 0x4b8   : > { %997 = vst.msk [vmem:[#allocation4 + $0x10] sm:$0xff] %vm471_vm5, %v992_v22  ;;  %v1562_v22 = vld [vmem:[%s2766_s22] ss:$0 sm:$0xff] }
 0x4b9   : > { %v989_v12 = vpop.xlane.xlu1 %988  ;;  %v980_v14 = vpop.xlane.xlu0 %979 }
 0x4ba   : > { %v993_v15 = vadd.f32 %v989_v12, %v977_v23  ;;  %v990_v25 = vadd.f32 %v980_v14, %v974_v24 }
 0x4bb   : > { %v1236_v26 = vld [vmem:[#allocation4 + $0x8] sm:$0xff] }
 0x4bc   : > { %998 = vst.msk [vmem:[#allocation4 + $0x18] sm:$0xff] %vm471_vm5, %v993_v15  ;;  %995 = vst.msk [vmem:[#allocation4] sm:$0xff] %vm471_vm5, %v990_v25  ;;  %1834 = vrcp.f32 %v1236_v26 }
 0x4bd   : > { %v1011_v35 = vpop.permute.xlu1 %1010 }
 0x4be   : > { %v1024_v36 = vmul.f32 %v1011_v35, %v1000_v34 }
 0x4bf   : > { %v1237_v27 = vld [vmem:[#allocation4 + $0x10] sm:$0xff] }
 0x4c0   : > { %1836 = vrcp.f32 %v1237_v27 }
 0x4c1   : > { %v1016_v38 = vpop.permute.xlu0 %1015  ;;  %v1021_v46 = vpop.permute.xlu1 %1020 }
 0x4c2   : > { %v1025_v43 = vmul.f32 %v1016_v38, %v1001_v37  ;;  %v1026_v51 = vmul.f32 %v1021_v46, %v1002_v45 }
 0x4c3   : > { %v1238_v28 = vld [vmem:[#allocation4 + $0x18] sm:$0xff]  ;;  %v1235_v29 = vld [vmem:[#allocation4] sm:$0xff] }
 0x4c4   : > { %1838 = vrcp.f32 %v1238_v28 }
 0x4c5   : > { %1840 = vrcp.f32 %v1235_v29 }
 0x4c6   : > { %v1835_v30 = vpop.eup %1834 }
 0x4c7   : > { %1250 = vperm.xlu1 %1809, %v1835_v30  }
 0x4ca   : > { %v1837_v31 = vpop.eup %1836 }
 0x4cb   : > { %1255 = vperm.xlu0 %1808, %v1837_v31  }
 0x4ce   : > { %v1839_v32 = vpop.eup %1838 }
 0x4cf   : > { %1260 = vperm.xlu1 %1809, %v1839_v32   ;;  %1005 = vperm.xlu0 %1808, %v1833_v18   ;;  %v1841_v33 = vpop.eup %1840 }
 0x4d3   : > { %1245 = vperm.xlu1 %1809, %v1841_v33  }
 0x4f9   : > { %v1118_v39 = vpop.f32.mrb[16].mxu0 }
 0x4fa   : > { %v1217_v40 = vadd.f32 %v1118_v39, %v1024_v36  ;;  %v1656_v41 = vpop.f32.mrb[17].mxu0 }
 0x4fb   : > { %v1121_v42 = vpop.f32.mrb[18].mxu0 }
 0x4fc   : > { %1221 = vst.msk [vmem:[#allocation5 + $0x8] sm:$0xff] %vm480_vm2, %v1217_v40  ;;  %v1657_v44 = vpop.f32.mrb[19].mxu0 }
 0x4fd   : > { %v1164_v47 = vpop.f32.mrb[16].mxu1 }
 0x4fe   : > { %v1218_v48 = vadd.f32 %v1164_v47, %v1025_v43  ;;  %v1662_v49 = vpop.f32.mrb[17].mxu1 }
 0x4ff   : > { %v1167_v50 = vpop.f32.mrb[18].mxu1 }
 0x500   : > { %1222 = vst.msk [vmem:[#allocation5 + $0x10] sm:$0xff] %vm480_vm2, %v1218_v48  ;;  %v1663_v52 = vpop.f32.mrb[19].mxu1 }
 0x501   : > { %v1210_v53 = vpop.f32.mrb[20].mxu0 }
 0x502   : > { %v1219_v54 = vadd.f32 %v1210_v53, %v1026_v51  ;;  %v1668_v55 = vpop.f32.mrb[21].mxu0 }
 0x503   : > { %v1213_v56 = vpop.f32.mrb[22].mxu0  ;;  %v1232_v60 = vld [vmem:[#allocation5 + $0x8] sm:$0xff] }
 0x504   : > { %1223 = vst.msk [vmem:[#allocation5 + $0x18] sm:$0xff] %vm480_vm2, %v1219_v54  ;;  %v1669_v57 = vpop.f32.mrb[23].mxu0 }
 0x507   : > { %v1233_v63 = vld [vmem:[#allocation5 + $0x10] sm:$0xff] }
 0x50b   : > { %v1234_v5 = vld [vmem:[#allocation5 + $0x18] sm:$0xff] }
 0x546   : > { %v1251_v61 = vpop.permute.xlu1 %1250 }
 0x547   : > { %v1264_v62 = vmul.f32 %v1251_v61, %v1232_v60 }
 0x549   : > { %1268 = vrot.lane.b32.xlu0 %v1264_v62, %s2127_s24 }
 0x54a   : > { %v1256_v1 = vpop.permute.xlu0 %1255 }
 0x54b   : > { %v1265_v2 = vmul.f32 %v1256_v1, %v1233_v63 }
 0x54d   : > { %1272 = vrot.lane.b32.xlu1 %v1265_v2, %s2128_s16 }
 0x54e   : > { %v1261_v6 = vpop.permute.xlu1 %1260  ;;  %v1006_v7 = vpop.permute.xlu0 %1005 }
 0x54f   : > { %v1266_v8 = vmul.f32 %v1261_v6, %v1234_v5  ;;  %v1023_v9 = vmul.f32 %v1006_v7, %v999_v3 }
 0x551   : > { %v1216_v0 = vadd.f32 %v2618_v4, %v1023_v9  ;;  %1276 = vrot.lane.b32.xlu0 %v1266_v8, %s2129_s12 }
 0x552   : > { %v1246_v10 = vpop.permute.xlu1 %1245 }
 0x553   : > { %1220 = vst.msk [vmem:[#allocation5] sm:$0xff] %vm480_vm2, %v1216_v0 }
 0x55a   : > { %v1231_v11 = vld [vmem:[#allocation5] sm:$0xff] }
 0x55b   : > { %v1263_v16 = vmul.f32 %v1246_v10, %v1231_v11 }
 0x5bb   : > { %v1269_v13 = vpop.permute.xlu0 %1268 }
 0x5bc   : > { %v1279_v18 = vsel %vm480_vm2, %v1263_v16, %v1269_v13 }
 0x5bf   : > { %v1273_v17 = vpop.permute.xlu1 %1272 }
 0x5c0   : > { %v1281_v19 = vsel %vm1280_vm6, %v1279_v18, %v1273_v17 }
 0x5c3   : > { %v1277_v20 = vpop.permute.xlu0 %1276 }
 0x5c4   : > { %v1283_v21 = vsel %vm1282_vm7, %v1281_v19, %v1277_v20 }
 0x5c5   : > { %v1284_v4 = vpack.c.bf16 %v1283_v21, %v1283_v21 }
 0x5c7   : > { %1675 = vmatmul.mubr.msk.bf16.vlgmr.msra.gmra.mrb[20].mxu1 %vm503_vm1, %v1284_v4 }
 0x69a   : > { %v1345_v23 = vpop.f32.mrb[20].mxu1 }
 0x69b   : > { %v1346_v24 = vadd.f32 %v1562_v22, %v1345_v23  ;;  %v1676_v12 = vpop.f32.mrb[21].mxu1 }
 0x69c   : > { %v1348_v14 = vpop.f32.mrb[22].mxu1 }
 0x69d   : > { %v1677_v15 = vpop.f32.mrb[23].mxu1  ;;  %1351 = vst.msk [vmem:[%s465_s30] sm:$0xff] %vm503_vm1, %v1346_v24 }
 0x69e   : > { %2029 = shalt.err (!%p2026_p12)
}
 0x69f   : > { %s2030_s3 = scalar_lea.hbm %s2643_s26, 128  ;;  %s2034_s9 = scalar_lea.hbm %s2768_s20, 256 }
 0x6a0   : > { %p2031_p8 = scmp.ne.s32.totalorder %s2643_s26, %s2030_s3  ;;  %p2035_p5 = scmp.lt.u32.totalorder %s2643_s26, %s2768_s20 }
 0x6a1   : > { %p2036_p9 = scmp.lt.u32.totalorder %s2034_s9, %s2030_s3  ;;  %p2038_p4 = scmp.lt.u32.totalorder %s2030_s3, %s2643_s26 }
 0x6a2   : > { %p2032_p11 = pnand %p2031_p8, %p2769_p7 }
 0x6a3   : > { %p2037_p2 = por %p2036_p9, %p2035_p5 }
 0x6a4   : > { %p2033_p10 = pneg %p2032_p11 }
 0x6a5   : > { %p2039_p3 = por %p2038_p4, %p2037_p2 }
 0x6a7   : > { %p2040_p1 = pnand %p2039_p3, %p2033_p10 }
 0x6a9   : > { %2043 = shalt.err (!%p2040_p1)
}
 0x6aa   : > { %1696 = dma.vmem_to_hbm [thread:$0]  (%p2769_p7), %s2645_s25, 128, %s2643_s26, %s1353_s11  }
 0x6ab PF: > { %s2770_s12 = sld [smem:[#allocation23_spill]]  ;;  %s2771_s27 = sld [smem:[#allocation27_spill]] }
 0x6ac   : > { %s2772_s19 = sld [smem:[#allocation26_spill]] }
 0x6b1   : > { %s1379_s17 = sand.u32 1, %s2770_s12   ;;  %p2773_p13 = scmp.ne.s32.totalorder %s2771_s27, 0 }
 0x6b2   : > { %p2774_p6 = scmp.ge.s32.totalorder %s2772_s19, 2  ;;  %s1380_s22 = scalar_lea.sflag [#allocation8], %s1379_s17 }
 0x6b4   : > { %p1719_p0 = pnand %p2774_p6, %p2773_p13 }
 0x6b6   : > { %2085 = dma.done.wait (!%p1719_p0), %s1380_s22, 128  }
 0x6b7   : > { %2087 = vsyncadd (!%p1719_p0), %s1380_s22, 4294967168  ;;  %s29_s10 = sadd.s32 1, %s2772_s19   ;;  %s2775_s8 = sld [smem:[#allocation30_spill]] }
 0x6b8   : > { %p26_p12 = scmp.ge.s32.totalorder %s29_s10, 4   ;;  %s2776_s30 = sld [smem:[#allocation25_spill]] }
 0x6b9   : > { %s2777_s9 = sld [smem:[#allocation28_spill]]  ;;  %s2778_s27 = smov %s2094_s28 }
 0x6ba   : > { %s2779_s28 = smov %s2098_s29  ;;  %28 = sbr.rel (!%p26_p12) target bundleno = 15 (0xf), region = 141 }
 0x6bd   : > { %s2780_s29 = smov %s2775_s8 }
 0x6c1   :  { %1385 = vsyncpa [#allocation7], 1 }
 0x6c2   :  { %1387 = vsyncpa [#allocation7 + $0x1], 1 }
 0x6c3   :  { %1388 = vsyncpa [#allocation10], 1 }
 0x6c4   :  { %1390 = vsyncpa [#allocation10 + $0x1], 1 }
 0x6c5   :  { %1391 = vsyncpa [#allocation13], 1 }
 0x6c6   :  { %1392 = vsyncpa [#allocation16], 1 }
 0x6c7   :  { %1393 = vsyncpa [#allocation8], 1 }
 0x6c8   :  { %1395 = vsyncpa [#allocation8 + $0x1], 1 }

</bundles_post_ra>
